<compile_context>
chip_gen: v7x
topology: tpu7x:2x2x1
jax: 0.10.0
libtpu: 0.0.40
codegen_flags: <defaults>
</compile_context>

<pallas_src>
import functools

import jax
import jax.numpy as jnp
from jax.experimental import pallas as pl
from jax.experimental.pallas import tpu as pltpu


# ----------------------------- model dims -----------------------------------
N_AGENTS = 4
STATE_DIM = 32
EMBED_DIM = 8                       # mixing_embed_dim
HID = EMBED_DIM * 2                 # hypernet_hidden = 16
CW = 4 * HID                        # 64: fused stage width / packed slab width

# packed parameter slab layout (rows, CW columns)
R_W1 = 0                            # rows [0,32)    : stage-1 weight (S, 4H)
R_W2 = R_W1 + STATE_DIM             # rows [32,96)   : stage-2 weight (4H, 4H) block-diag
R_W3 = R_W2 + CW                    # rows [96,160)  : stage-3 weight (4H, 4H) block-diag
R_B = R_W3 + CW                     # rows [160,168) : 3 bias rows (+5 zero pad rows)
SLAB_ROWS = R_B + 8                 # 168

LANES = 128                         # lane-dense output width
TB = 128                            # batch tile (>=128 fills MXU sublanes)
BATCH = 512                         # example batch -> grid of 4 (>=2 for v7x dual-TC)

assert 2 * HID + 2 * EMBED_DIM <= CW            # stage-2 useful width fits
assert N_AGENTS * EMBED_DIM + 1 <= CW           # stage-3 useful width fits


def _relu(x):
    return jnp.maximum(x, 0.0)


def _elu(x):
    # elu(x) = x if x > 0 else exp(x) - 1   (exp on positives is discarded, no NaN)
    return jnp.where(x > 0.0, x, jnp.exp(x) - 1.0)


# ------------------------------- kernel --------------------------------------
def mixing_kernel(qs_ref, s_ref, p_ref, o_ref, *, mm_dtype):
    f32 = jnp.float32
    q = qs_ref[...].astype(f32)                      # (TB, A)
    s = s_ref[...]                                   # (TB, S)

    # static slices of the single packed parameter slab (one DMA for everything)
    W1 = p_ref[R_W1:R_W1 + STATE_DIM, :]             # (S,  CW)
    W2 = p_ref[R_W2:R_W2 + CW, :]                    # (CW, CW)
    W3 = p_ref[R_W3:R_W3 + CW, :]                    # (CW, CW)
    b1 = p_ref[R_B + 0:R_B + 1, :].astype(f32)       # (1, CW)
    b2 = p_ref[R_B + 1:R_B + 2, :].astype(f32)
    b3 = p_ref[R_B + 2:R_B + 3, :].astype(f32)

    def mm(x, w):
        return jnp.dot(x.astype(mm_dtype), w, preferred_element_type=f32)

    # stage 1: all four first hypernet layers fused (concatenated columns)
    z1 = _relu(mm(s, W1) + b1)                       # (TB, CW)

    # stage 2: block-diagonal second layers; cols [0:2H+2E) meaningful
    z2 = mm(z1, W2) + b2                             # (TB, CW)
    w2_mix = jnp.abs(z2[:, HID:HID + EMBED_DIM])                 # (TB, E)
    b1_mix = z2[:, HID + EMBED_DIM:HID + 2 * EMBED_DIM]          # (TB, E)

    # stage 3: block-diagonal third layers; cols [0:A*E+1) meaningful
    z3 = mm(_relu(z2), W3) + b3                      # (TB, CW)
    w1_mix = jnp.abs(z3[:, 0:N_AGENTS * EMBED_DIM])              # (TB, A*E)
    b2_mix = z3[:, N_AGENTS * EMBED_DIM:N_AGENTS * EMBED_DIM + 1]  # (TB, 1)

    # mixing: hidden[b, e] = sum_a q[b, a] * w1[b, a*E + e]  (bmm(1xA, AxE))
    # TODO(synk): low-priority alternative is a constant 0/1 expansion matmul on the MXU.
    hidden = b1_mix
    for a in range(N_AGENTS):                        # static unroll
        hidden = hidden + q[:, a:a + 1] * w1_mix[:, a * EMBED_DIM:(a + 1) * EMBED_DIM]
    hidden = _elu(hidden)                            # (TB, E)

    # y[b] = sum_e hidden[b, e] * w2[b, e] + b2[b]   (bmm(1xE, Ex1))
    y = jnp.sum(hidden * w2_mix, axis=-1, keepdims=True) + b2_mix    # (TB, 1)

    # lane-dense write (unmasked stores); wrapper keeps column 0 only
    o_ref[...] = jnp.broadcast_to(y, o_ref.shape).astype(o_ref.dtype)


# --------------------------- parameter packing --------------------------------
def pack_params(params, dtype=jnp.float32):
    """Fuse the 20 per-layer arrays into one (SLAB_ROWS, CW) slab.

    In a real training loop this would be done once per parameter update,
    not on every forward call.
    """
    (w1a_w, w1a_b, w1b_w, w1b_b, w1c_w, w1c_b,
     w2a_w, w2a_b, w2b_w, w2b_b,
     b1a_w, b1a_b, b1b_w, b1b_b,
     b2a_w, b2a_b, b2c_w_hid, b2c_b_hid, b2c_w, b2c_b) = params

    H, E, A = HID, EMBED_DIM, N_AGENTS

    # stage 1: concat first layers along output columns: [w1 | w2 | b1 | b2]
    W1 = jnp.concatenate([w1a_w, w2a_w, b1a_w, b2a_w], axis=1)        # (S, 4H)
    B1 = jnp.concatenate([w1a_b, w2a_b, b1a_b, b2a_b], axis=1)        # (1, 4H)

    # stage 2: block-diagonal; output cols [w1_hid(0:H) | w2_out(H:H+E) |
    #                                       b1_out(H+E:H+2E) | b2_hid(H+2E:2H+2E)]
    W2 = jnp.zeros((CW, CW), jnp.float32)
    W2 = W2.at[0:H, 0:H].set(w1b_w)
    W2 = W2.at[H:2 * H, H:H + E].set(w2b_w)
    W2 = W2.at[2 * H:3 * H, H + E:H + 2 * E].set(b1b_w)
    W2 = W2.at[3 * H:4 * H, H + 2 * E:2 * H + 2 * E].set(b2c_w_hid)
    B2 = jnp.zeros((1, CW), jnp.float32)
    B2 = B2.at[:, 0:H].set(w1b_b)
    B2 = B2.at[:, H:H + E].set(w2b_b)
    B2 = B2.at[:, H + E:H + 2 * E].set(b1b_b)
    B2 = B2.at[:, H + 2 * E:2 * H + 2 * E].set(b2c_b_hid)

    # stage 3: block-diagonal; output cols [w1_flat(0:A*E) | b2(A*E:A*E+1)]
    W3 = jnp.zeros((CW, CW), jnp.float32)
    W3 = W3.at[0:H, 0:A * E].set(w1c_w)
    W3 = W3.at[H + 2 * E:2 * H + 2 * E, A * E:A * E + 1].set(b2c_w)
    B3 = jnp.zeros((1, CW), jnp.float32)
    B3 = B3.at[:, 0:A * E].set(w1c_b)
    B3 = B3.at[:, A * E:A * E + 1].set(b2c_b)

    bias_block = jnp.zeros((8, CW), jnp.float32)
    bias_block = bias_block.at[0:1].set(B1).at[1:2].set(B2).at[2:3].set(B3)

    slab = jnp.concatenate([W1, W2, W3, bias_block], axis=0)          # (168, CW)
    assert slab.shape == (SLAB_ROWS, CW)
    return slab.astype(dtype)


# ------------------------------- wrapper --------------------------------------
def mixing_net_forward(agent_qs, states, params, *, tb=TB, use_bf16=False):
    B = agent_qs.shape[0]
    mm_dtype = jnp.bfloat16 if use_bf16 else jnp.float32
    slab = pack_params(params, dtype=mm_dtype)

    # pad the batch to a multiple of the tile
    Bp = ((B + tb - 1) // tb) * tb
    if Bp != B:
        pad = Bp - B
        agent_qs = jnp.pad(agent_qs, ((0, pad), (0, 0)))
        states = jnp.pad(states, ((0, pad), (0, 0)))

    kernel = functools.partial(mixing_kernel, mm_dtype=mm_dtype)

    out = pl.pallas_call(
        kernel,
        out_shape=jax.ShapeDtypeStruct((Bp, LANES), jnp.float32),
        grid_spec=pltpu.PrefetchScalarGridSpec(
            num_scalar_prefetch=0,
            grid=(Bp // tb,),
            in_specs=[
                pl.BlockSpec((tb, N_AGENTS), lambda i: (i, 0)),
                pl.BlockSpec((tb, STATE_DIM), lambda i: (i, 0)),
                pl.BlockSpec((SLAB_ROWS, CW), lambda i: (0, 0)),   # broadcast slab
            ],
            out_specs=pl.BlockSpec((tb, LANES), lambda i: (i, 0)),
        ),
        compiler_params=pltpu.CompilerParams(
            dimension_semantics=("parallel",),   # batch tiles shard across v7x TCs
        ),
    )(agent_qs, states, slab)

    return out[:B, :1]


# --------------------------- init + reference ---------------------------------
def init_params(key):
    """Deterministic parameter init matching the PyTorch module's shapes."""
    def lin(key, fan_in, fan_out):
        kw, kb = jax.random.split(key)
        bound = 1.0 / jnp.sqrt(float(fan_in))
        w = jax.random.uniform(kw, (fan_in, fan_out), jnp.float32, -bound, bound)
        b = jax.random.uniform(kb, (1, fan_out), jnp.float32, -bound, bound)
        return w, b

    keys = jax.random.split(key, 10)
    params = []
    # hyper_w1
    params += lin(keys[0], STATE_DIM, HID)
    params += lin(keys[1], HID, HID)
    params += lin(keys[2], HID, EMBED_DIM * N_AGENTS)
    # hyper_w2
    params += lin(keys[3], STATE_DIM, HID)
    params += lin(keys[4], HID, EMBED_DIM)
    # hyper_b1
    params += lin(keys[5], STATE_DIM, HID)
    params += lin(keys[6], HID, EMBED_DIM)
    # hyper_b2
    params += lin(keys[7], STATE_DIM, HID)
    params += lin(keys[8], HID, HID)
    params += lin(keys[9], HID, 1)
    return tuple(params)


def mixing_net_reference(agent_qs, states, params):
    """Pure-JAX reference mirroring the PyTorch forward."""
    (w1a_w, w1a_b, w1b_w, w1b_b, w1c_w, w1c_b,
     w2a_w, w2a_b, w2b_w, w2b_b,
     b1a_w, b1a_b, b1b_w, b1b_b,
     b2a_w, b2a_b, b2b_w, b2b_b, b2c_w, b2c_b) = params
    B = agent_qs.shape[0]

    def lin(x, w, b):
        return x @ w + b

    relu = jax.nn.relu
    w1 = jnp.abs(lin(relu(lin(relu(lin(states, w1a_w, w1a_b)), w1b_w, w1b_b)), w1c_w, w1c_b))
    w2 = jnp.abs(lin(relu(lin(states, w2a_w, w2a_b)), w2b_w, w2b_b))
    b1 = lin(relu(lin(states, b1a_w, b1a_b)), b1b_w, b1b_b)
    b2 = lin(relu(lin(relu(lin(states, b2a_w, b2a_b)), b2b_w, b2b_b)), b2c_w, b2c_b)

    w1 = w1.reshape(B, N_AGENTS, EMBED_DIM)
    w2 = w2.reshape(B, EMBED_DIM, 1)
    b1 = b1.reshape(B, 1, EMBED_DIM)
    qs = agent_qs.reshape(B, 1, N_AGENTS)
    hidden = jax.nn.elu(jnp.einsum("bia,bae->bie", qs, w1) + b1)
    y = jnp.einsum("bie,beo->bio", hidden, w2) + b2.reshape(B, 1, 1)
    return y.reshape(B, 1)


if __name__ == "__main__":
    key = jax.random.PRNGKey(0)
    k_params, k_qs, k_states = jax.random.split(key, 3)

    params = init_params(k_params)
    agent_qs = jax.random.normal(k_qs, (BATCH, N_AGENTS), jnp.float32)
    states = jax.random.normal(k_states, (BATCH, STATE_DIM), jnp.float32)

    out = mixing_net_forward(agent_qs, states, params)   # f32 matmuls (exact parity)
    out = jax.block_until_ready(out)

    ref = mixing_net_reference(agent_qs, states, params)
    assert out.shape == (BATCH, 1)
    assert jnp.allclose(out, ref, atol=1e-4, rtol=1e-4), (out, ref)

    print("KERNEL_OK")
</pallas_src>

<mosaic_0001>
module attributes {stable_mosaic.version = 11 : i64} {
  func.func @mixing_kernel(%arg0: i32, %arg1: memref<128x4xf32, #tpu.memory_space<vmem>>, %arg2: memref<128x32xf32, #tpu.memory_space<vmem>>, %arg3: memref<168x64xf32, #tpu.memory_space<vmem>>, %arg4: memref<128x128xf32, #tpu.memory_space<vmem>>) attributes {dimension_semantics = [#tpu.dimension_semantics<parallel>], iteration_bounds = array<i64: 4>, scalar_prefetch = 0 : i64, scratch_operands = 0 : i64, tpu.core_type = #tpu.core_type<tc>, window_params = [{transform_indices = @transform_0, window_bounds = array<i64: 128, 4>}, {transform_indices = @transform_1, window_bounds = array<i64: 128, 32>}, {pipeline_mode = #tpu.pipeline_mode<synchronous>, transform_indices = @transform_2, window_bounds = array<i64: 168, 64>}, {transform_indices = @transform_3, window_bounds = array<i64: 128, 128>}]} {
    %c0 = arith.constant 0 : index
    %c0_0 = arith.constant 0 : index
    %0 = vector.load %arg1[%c0, %c0_0] : memref<128x4xf32, #tpu.memory_space<vmem>>, vector<128x4xf32>
    %c0_1 = arith.constant 0 : index
    %c0_2 = arith.constant 0 : index
    %1 = vector.load %arg2[%c0_1, %c0_2] : memref<128x32xf32, #tpu.memory_space<vmem>>, vector<128x32xf32>
    %c0_3 = arith.constant 0 : index
    %c0_4 = arith.constant 0 : index
    %2 = vector.load %arg3[%c0_3, %c0_4] : memref<168x64xf32, #tpu.memory_space<vmem>>, vector<32x64xf32>
    %c32 = arith.constant 32 : index
    %c0_5 = arith.constant 0 : index
    %3 = vector.load %arg3[%c32, %c0_5] : memref<168x64xf32, #tpu.memory_space<vmem>>, vector<64x64xf32>
    %c96 = arith.constant 96 : index
    %c0_6 = arith.constant 0 : index
    %4 = vector.load %arg3[%c96, %c0_6] : memref<168x64xf32, #tpu.memory_space<vmem>>, vector<64x64xf32>
    %c160 = arith.constant 160 : index
    %c0_7 = arith.constant 0 : index
    %5 = vector.load %arg3[%c160, %c0_7] : memref<168x64xf32, #tpu.memory_space<vmem>>, vector<1x64xf32>
    %c161 = arith.constant 161 : index
    %c0_8 = arith.constant 0 : index
    %6 = vector.load %arg3[%c161, %c0_8] : memref<168x64xf32, #tpu.memory_space<vmem>>, vector<1x64xf32>
    %c162 = arith.constant 162 : index
    %c0_9 = arith.constant 0 : index
    %7 = vector.load %arg3[%c162, %c0_9] : memref<168x64xf32, #tpu.memory_space<vmem>>, vector<1x64xf32>
    %cst = arith.constant dense<0.000000e+00> : vector<128x64xf32>
    %8 = tpu.matmul %1, %2, %cst {dimension_numbers = #tpu.dot_dimension_numbers<[1], [0], [0], [1], [0, 0, 1, 1], [], []>} : vector<128x32xf32>, vector<32x64xf32>, vector<128x64xf32> -> vector<128x64xf32>
    %9 = vector.broadcast %5 : vector<1x64xf32> to vector<128x64xf32>
    %10 = arith.addf %8, %9 : vector<128x64xf32>
    %cst_10 = arith.constant 0.000000e+00 : f32
    %11 = vector.broadcast %cst_10 : f32 to vector<128x64xf32>
    %12 = arith.maximumf %10, %11 : vector<128x64xf32>
    %cst_11 = arith.constant dense<0.000000e+00> : vector<128x64xf32>
    %13 = tpu.matmul %12, %3, %cst_11 {dimension_numbers = #tpu.dot_dimension_numbers<[1], [0], [0], [1], [0, 0, 1, 1], [], []>} : vector<128x64xf32>, vector<64x64xf32>, vector<128x64xf32> -> vector<128x64xf32>
    %14 = vector.broadcast %6 : vector<1x64xf32> to vector<128x64xf32>
    %15 = arith.addf %13, %14 : vector<128x64xf32>
    %16 = vector.extract_strided_slice %15 {offsets = [0, 16], sizes = [128, 8], strides = [1, 1]} : vector<128x64xf32> to vector<128x8xf32>
    %17 = math.absf %16 : vector<128x8xf32>
    %18 = vector.extract_strided_slice %15 {offsets = [0, 24], sizes = [128, 8], strides = [1, 1]} : vector<128x64xf32> to vector<128x8xf32>
    %cst_12 = arith.constant 0.000000e+00 : f32
    %19 = vector.broadcast %cst_12 : f32 to vector<128x64xf32>
    %20 = arith.maximumf %15, %19 : vector<128x64xf32>
    %cst_13 = arith.constant dense<0.000000e+00> : vector<128x64xf32>
    %21 = tpu.matmul %20, %4, %cst_13 {dimension_numbers = #tpu.dot_dimension_numbers<[1], [0], [0], [1], [0, 0, 1, 1], [], []>} : vector<128x64xf32>, vector<64x64xf32>, vector<128x64xf32> -> vector<128x64xf32>
    %22 = vector.broadcast %7 : vector<1x64xf32> to vector<128x64xf32>
    %23 = arith.addf %21, %22 : vector<128x64xf32>
    %24 = vector.extract_strided_slice %23 {offsets = [0, 0], sizes = [128, 32], strides = [1, 1]} : vector<128x64xf32> to vector<128x32xf32>
    %25 = math.absf %24 : vector<128x32xf32>
    %26 = vector.extract_strided_slice %23 {offsets = [0, 32], sizes = [128, 1], strides = [1, 1]} : vector<128x64xf32> to vector<128x1xf32>
    %27 = vector.extract_strided_slice %0 {offsets = [0, 0], sizes = [128, 1], strides = [1, 1]} : vector<128x4xf32> to vector<128x1xf32>
    %28 = vector.extract_strided_slice %25 {offsets = [0, 0], sizes = [128, 8], strides = [1, 1]} : vector<128x32xf32> to vector<128x8xf32>
    %29 = vector.broadcast %27 : vector<128x1xf32> to vector<128x8xf32>
    %30 = arith.mulf %29, %28 : vector<128x8xf32>
    %31 = arith.addf %18, %30 : vector<128x8xf32>
    %32 = vector.extract_strided_slice %0 {offsets = [0, 1], sizes = [128, 1], strides = [1, 1]} : vector<128x4xf32> to vector<128x1xf32>
    %33 = vector.extract_strided_slice %25 {offsets = [0, 8], sizes = [128, 8], strides = [1, 1]} : vector<128x32xf32> to vector<128x8xf32>
    %34 = vector.broadcast %32 : vector<128x1xf32> to vector<128x8xf32>
    %35 = arith.mulf %34, %33 : vector<128x8xf32>
    %36 = arith.addf %31, %35 : vector<128x8xf32>
    %37 = vector.extract_strided_slice %0 {offsets = [0, 2], sizes = [128, 1], strides = [1, 1]} : vector<128x4xf32> to vector<128x1xf32>
    %38 = vector.extract_strided_slice %25 {offsets = [0, 16], sizes = [128, 8], strides = [1, 1]} : vector<128x32xf32> to vector<128x8xf32>
    %39 = vector.broadcast %37 : vector<128x1xf32> to vector<128x8xf32>
    %40 = arith.mulf %39, %38 : vector<128x8xf32>
    %41 = arith.addf %36, %40 : vector<128x8xf32>
    %42 = vector.extract_strided_slice %0 {offsets = [0, 3], sizes = [128, 1], strides = [1, 1]} : vector<128x4xf32> to vector<128x1xf32>
    %43 = vector.extract_strided_slice %25 {offsets = [0, 24], sizes = [128, 8], strides = [1, 1]} : vector<128x32xf32> to vector<128x8xf32>
    %44 = vector.broadcast %42 : vector<128x1xf32> to vector<128x8xf32>
    %45 = arith.mulf %44, %43 : vector<128x8xf32>
    %46 = arith.addf %41, %45 : vector<128x8xf32>
    %cst_14 = arith.constant 0.000000e+00 : f32
    %47 = vector.broadcast %cst_14 : f32 to vector<128x8xf32>
    %48 = arith.cmpf ogt, %46, %47 : vector<128x8xf32>
    %49 = math.exp %46 : vector<128x8xf32>
    %cst_15 = arith.constant 1.000000e+00 : f32
    %50 = vector.broadcast %cst_15 : f32 to vector<128x8xf32>
    %51 = arith.subf %49, %50 : vector<128x8xf32>
    %52 = arith.select %48, %46, %51 : vector<128x8xi1>, vector<128x8xf32>
    %53 = arith.mulf %52, %17 : vector<128x8xf32>
    %cst_16 = arith.constant dense<0.000000e+00> : vector<128xf32>
    %54 = vector.multi_reduction <add>, %53, %cst_16 [1] : vector<128x8xf32> to vector<128xf32>
    %55 = vector.shape_cast %54 : vector<128xf32> to vector<128x1xf32>
    %56 = arith.addf %55, %26 : vector<128x1xf32>
    %57 = vector.shape_cast %56 : vector<128x1xf32> to vector<128x1xf32>
    %58 = vector.broadcast %57 : vector<128x1xf32> to vector<128x128xf32>
    %c0_17 = arith.constant 0 : index
    %c0_18 = arith.constant 0 : index
    %59 = vector.load %arg4[%c0_17, %c0_18] : memref<128x128xf32, #tpu.memory_space<vmem>>, vector<128x128xf32>
    tpu.vector_store %arg4[%c0_17, %c0_18], %58 {strides = array<i32>} : memref<128x128xf32, #tpu.memory_space<vmem>>, vector<128x128xf32>,
    return
  }
  func.func @transform_0(%arg0: i32) -> (i32, i32) {
    %c0_i32 = arith.constant 0 : i32
    %c0_i32_0 = arith.constant 0 : i32
    return %arg0, %c0_i32 : i32, i32
  }
  func.func @transform_1(%arg0: i32) -> (i32, i32) {
    %c0_i32 = arith.constant 0 : i32
    %c0_i32_0 = arith.constant 0 : i32
    return %arg0, %c0_i32 : i32, i32
  }
  func.func @transform_2(%arg0: i32) -> (i32, i32) {
    %c0_i32 = arith.constant 0 : i32
    %c0_i32_0 = arith.constant 0 : i32
    %c0_i32_1 = arith.constant 0 : i32
    return %c0_i32, %c0_i32_0 : i32, i32
  }
  func.func @transform_3(%arg0: i32) -> (i32, i32) {
    %c0_i32 = arith.constant 0 : i32
    %c0_i32_0 = arith.constant 0 : i32
    return %arg0, %c0_i32 : i32, i32
  }
}

</mosaic_0001>

<bundles_post_ra>
// kernel: tpu_custom_call.1
= control target key start
LH: loop header
LB: loop body
LE: loop exit
PB: predicated region body
PF: predicated region fallthrough
CT: control target
= control target key end

     0   :  { %8 = vsyncpa [#allocation3], 0  ;;  %s3433_s0 = inlined_call_operand.vmem [shape: f32[512,4], index: 0, kind: input, shape index: {}]   ;;  %s3434_s1 = inlined_call_operand.vmem [shape: f32[512,32], index: 1, kind: input, shape index: {}]   ;;  %s3435_s2 = inlined_call_operand.vmem [shape: f32[168,64], index: 2, kind: input, shape index: {}]   ;;  %s3436_s3 = inlined_call_operand.hbm [shape: f32[512,128], index: 3, kind: output, shape index: {}]  }
   0x1   :  { %10 = vsyncpa [#allocation3 + $0x1], 0  ;;  %s2463_s12 = smov 0   ;;  %s2465_s13 = smov 0  }
   0x2   :  { %s2467_s14 = smov 0   ;;  %s2469_s15 = smov 0  }
   0x3 LB: > { %s2484_s16 = sadd.s32 4294967295, %s2430_s15   ;;  %s1971_s17 = sadd.s32 4294967294, %s2430_s15   ;;  %s2430_s15 = sphi %s2469_s15, %s3506_s15   ;;  %s2426_s14 = sphi %s2467_s14, %s3505_s14   ;;  %s2422_s13 = sphi %s2465_s13, %s3504_s13   ;;  %s2418_s12 = sphi %s2463_s12, %s3503_s12  }
   0x4   : > { %s2488_s18 = sadd.s32 1, %s2430_s15   ;;  %s96_s19 = sadd.s32 1, %s2426_s14 }
   0x5   : > { %s93_s20 = ssub.s32 %s2430_s15, %s2488_s18  ;;  %p106_p0 = scmp.ne.s32.totalorder %s2426_s14, %s2422_s13 }
   0x6   : > { %p94_p1 = scmp.eq.s32.totalorder %s93_s20, 0  ;;  %p107_p2 = scmp.eq.s32.totalorder %s2484_s16, 3 }
   0x7   : > { %p112_p3 = scmp.ne.s32.totalorder %s2422_s13, %s2418_s12  ;;  %p113_p4 = scmp.eq.s32.totalorder %s1971_s17, 3 }
   0x8   : > { %s2499_s21 = scalar_select %p94_p1, %s2426_s14, %s96_s19  }
   0x9   : > { %p2501_p5 = por %p107_p2, %p106_p0  ;;  %p2505_p6 = por %p113_p4, %p112_p3 }
   0xa   : > { %p1974_p7 = scmp.ge.s32.totalorder %s2430_s15, 1  ;;  %p152_p8 = scmp.lt.s32.totalorder %s2430_s15, 5 }
   0xc   : > { %p153_p9 = pnand %p1974_p7, %p152_p8 }
   0xe   : > { %156 = sbr.rel (%p153_p9) target bundleno = 1334 (0x536), region = 32 }
  0x15   : > { %v226_v0 = vld [vmem:[%s3435_s2] sm:$0xff]  ;;  %v227_v1 = vld [vmem:[%s3435_s2 + $0x8] sm:$0xff]  ;;  %v228_v2 = vld [vmem:[%s3435_s2 + $0x10] sm:$0xff]  ;;  %s1976_s30 = sshll.u32 %s2484_s16, 4  ;;  %vm253_vm0 = vcmask 261120   ;;  %v2432_v35 = vmov 0  }
  0x16   : > { %v2233_v3 = vpack.c.bf16 %v227_v1, %v226_v0  ;;  %v229_v4 = vld [vmem:[%s3435_s2 + $0x18] sm:$0xff]  ;;  %p182_p10 = scmp.lt.s32.totalorder %s1976_s30, 63  ;;  %v230_v6 = vld [vmem:[%s3435_s2 + $0x20] sm:$0xff]  ;;  %v231_v7 = vld [vmem:[%s3435_s2 + $0x28] sm:$0xff]  ;;  %2327 = vset.pattern.permute.xlu1 %v2432_v35  ;;  %2326 = vset.pattern.permute.xlu0 %v2432_v35  ;;  %v2433_v60 = vmov 1   ;;  %v2434_v61 = vmov 2  }
  0x17   : > { %v2237_v5 = vpack.c.bf16 %v229_v4, %v228_v2  ;;  %v2241_v8 = vpack.c.bf16 %v231_v7, %v230_v6  ;;  %v232_v10 = vld [vmem:[%s3435_s2 + $0x30] sm:$0xff]  ;;  %v233_v11 = vld [vmem:[%s3435_s2 + $0x38] sm:$0xff]  ;;  %v234_v18 = vld [vmem:[%s3435_s2 + $0x40] sm:$0xff]  ;;  %vm467_vm1 = vcmask 523264   ;;  %s2437_s25 = smov 16   ;;  %s2438_s26 = smov 24  }
  0x18   : > { %2234 = vmatprep.subr.bf16.mxu0 %v2233_v3  ;;  %s3508_s30 = smov (!%p182_p10, %s1976_s30), 63  ;;  %2273 = vmatprep.subr.bf16.mxu1 %v2233_v3  ;;  %v2245_v17 = vpack.c.bf16 %v233_v11, %v232_v10  ;;  %v235_v19 = vld [vmem:[%s3435_s2 + $0x48] sm:$0xff]  ;;  %v236_v31 = vld [vmem:[%s3435_s2 + $0x50] sm:$0xff]  ;;  %v237_v32 = vld [vmem:[%s3435_s2 + $0x58] sm:$0xff]  ;;  %s2439_s27 = smov 104  }
  0x19   : > { %2236 = vmatpush3.bf16.msra.mxu0 %v2233_v3  ;;  %2275 = vmatpush3.bf16.msra.mxu1 %v2233_v3  ;;  %s1977_s10 = sshll.u32 %s3508_s30, 3  ;;  %v2249_v24 = vpack.c.bf16 %v235_v19, %v234_v18  ;;  %v2253_v33 = vpack.c.bf16 %v237_v32, %v236_v31  ;;  %v238_v41 = vld [vmem:[%s3435_s2 + $0x60] sm:$0xff]  ;;  %v239_v42 = vld [vmem:[%s3435_s2 + $0x68] sm:$0xff]  ;;  %v240_v43 = vld [vmem:[%s3435_s2 + $0x70] sm:$0xff]  ;;  %s178_s28 = sand.u32 1, %s2422_s13  }
  0x1a   : > { %2238 = vmatprep.subr.bf16.mxu0 %v2237_v5  ;;  %2274 = vmatprep.subr.bf16.mxu1 %v2237_v5  ;;  %s2538_s19 = scalar_lea.vmem %s3434_s1, %s1977_s10  ;;  %s2595_s17 = scalar_lea.vmem %s3433_s0, %s1977_s10  ;;  %v2257_v44 = vpack.c.bf16 %v239_v42, %v238_v41  ;;  %v241_v45 = vld [vmem:[%s3435_s2 + $0x78] sm:$0xff]  ;;  %v242_v49 = vld [vmem:[%s3435_s2 + $0x80] sm:$0xff]  ;;  %v243_v50 = vld [vmem:[%s3435_s2 + $0x88] sm:$0xff] }
  0x1b   : > { %v210_v9 = vld [vmem:[%s2538_s19] sm:$0xff]  ;;  %v211_v12 = vld [vmem:[%s2538_s19 + $0x8] sm:$0xff]  ;;  %v212_v13 = vld [vmem:[%s2538_s19 + $0x10] sm:$0xff]  ;;  %v2261_v48 = vpack.c.bf16 %v241_v45, %v240_v43  ;;  %v2265_v53 = vpack.c.bf16 %v243_v50, %v242_v49  ;;  %s1975_s29 = sshll.u32 %s178_s28, 7  ;;  %s2052_s5 = sshll.u32 %s2484_s16, 11 }
  0x1c   : > { %2129 = vmatprep.mubr.msk.f32.mxu0 %vm253_vm0, %v210_v9  ;;  %v218_v14 = vld [vmem:[%s2538_s19 + $0x40] sm:$0xff]  ;;  %v219_v15 = vld [vmem:[%s2538_s19 + $0x48] sm:$0xff]  ;;  %v220_v16 = vld [vmem:[%s2538_s19 + $0x50] sm:$0xff]  ;;  %s3362_s4 = scalar_lea.vmem [#allocation2], %s1975_s29  ;;  %s3384_s9 = scalar_lea.hbm %s3436_s3, %s2052_s5 }
  0x1d   : > { %2240 = vmatpush3.bf16.msra.mxu0 %v2237_v5  ;;  %2276 = vmatpush3.bf16.msra.mxu1 %v2237_v5  ;;  %v213_v20 = vld [vmem:[%s2538_s19 + $0x18] sm:$0xff]  ;;  %v214_v21 = vld [vmem:[%s2538_s19 + $0x20] sm:$0xff]  ;;  %v215_v25 = vld [vmem:[%s2538_s19 + $0x28] sm:$0xff]  ;;  %v2435_v5 = vmov 3   ;;  %s1897_s6 = sshll.u32 %s3362_s4, 4  ;;  %s3391_s11 = scalar_lea.sflag [#allocation3], %s178_s28  ;;  %s3386_s6 = int_to_ptr.vmem [resolvable:$true] %s1897_s6 }
  0x1e   : > { %2141 = vmatprep.mubr.msk.f32.mxu1 %vm253_vm0, %v218_v14  ;;  %2242 = vmatprep.subr.bf16.mxu1 %v2241_v8  ;;  %v221_v22 = vld [vmem:[%s2538_s19 + $0x58] sm:$0xff]  ;;  %v222_v23 = vld [vmem:[%s2538_s19 + $0x60] sm:$0xff]  ;;  %v216_v26 = vld [vmem:[%s2538_s19 + $0x30] sm:$0xff]  ;;  %s2441_s16 = smov [#allocation2]  }
  0x1f   : > { %v223_v27 = vld [vmem:[%s2538_s19 + $0x68] sm:$0xff]  ;;  %v224_v28 = vld [vmem:[%s2538_s19 + $0x70] sm:$0xff]  ;;  %v217_v29 = vld [vmem:[%s2538_s19 + $0x38] sm:$0xff]  ;;  %2258 = vmatprep.subr.bf16.mxu0 %v2257_v44  ;;  %s2372_s30 = sshll.u32 %s2441_s16, 4  ;;  %s2373_s30 = int_to_ptr.vmem [resolvable:$false] %s2372_s30 }
  0x20   : > { %2130 = vmatmul.mubr.msk.f32.vlgmr.msra.gmra.mrb[0].mxu0 %vm253_vm0, %v211_v12  ;;  %2142 = vmatmul.mubr.msk.f32.vlgmr.msra.gmra.mrb[0].mxu1 %vm253_vm0, %v219_v15  ;;  %v225_v30 = vld [vmem:[%s2538_s19 + $0x78] sm:$0xff]  ;;  %v2598_v34 = vld [vmem:[%s2595_s17 + $0x10] sm:$0xff]  ;;  %v2601_v36 = vld [vmem:[%s2595_s17] sm:$0xff]  ;;  %s2436_s19 = smov 8   ;;  %s2374_s10 = scalar_lea.vmem %s2373_s30, 4096 }
  0x21   : > { %2132 = vmatprep.mubr.msk.f32.mxu0 %vm253_vm0, %v212_v13  ;;  %2144 = vmatprep.mubr.msk.f32.mxu1 %vm253_vm0, %v220_v16  ;;  %v2606_v37 = vld [vmem:[%s2595_s17 + $0x18] sm:$0xff]  ;;  %v2609_v38 = vld [vmem:[%s2595_s17 + $0x8] sm:$0xff]  ;;  %v2617_v40 = vld [vmem:[%s2595_s17 + $0x20] sm:$0xff]  ;;  %p2375_p0 = scmp.lt.s32.totalorder %s3386_s6, %s2373_s30 }
  0x22   : > { %2244 = vmatpush3.bf16.msra.mxu1 %v2241_v8  ;;  %918 = vperm.xlu1 %2327, %v2598_v34   ;;  %v2614_v39 = vld [vmem:[%s2595_s17 + $0x28] sm:$0xff]  ;;  %v2634_v46 = vld [vmem:[%s2595_s17 + $0x38] sm:$0xff]  ;;  %v2637_v47 = vld [vmem:[%s2595_s17 + $0x30] sm:$0xff] }
  0x23   : > { %2246 = vmatprep.subr.bf16.mxu1 %v2245_v17  ;;  %908 = vperm.xlu0 %2326, %v2601_v36   ;;  %v2648_v51 = vld [vmem:[%s2595_s17 + $0x48] sm:$0xff]  ;;  %v2651_v52 = vld [vmem:[%s2595_s17 + $0x40] sm:$0xff]  ;;  %v2656_v54 = vld [vmem:[%s2595_s17 + $0x58] sm:$0xff] }
  0x24   : > { %2133 = vmatmul.mubr.msk.f32.gmra.mrb[2].mxu0 %vm253_vm0, %v213_v20  ;;  %2145 = vmatmul.mubr.msk.f32.gmra.mrb[2].mxu1 %vm253_vm0, %v221_v22  ;;  %v2659_v55 = vld [vmem:[%s2595_s17 + $0x50] sm:$0xff]  ;;  %v2664_v56 = vld [vmem:[%s2595_s17 + $0x68] sm:$0xff]  ;;  %v2667_v57 = vld [vmem:[%s2595_s17 + $0x60] sm:$0xff] }
  0x25   : > { %2135 = vmatprep.mubr.msk.f32.mxu0 %vm253_vm0, %v214_v21  ;;  %2147 = vmatprep.mubr.msk.f32.mxu1 %vm253_vm0, %v222_v23  ;;  %v2672_v58 = vld [vmem:[%s2595_s17 + $0x78] sm:$0xff]  ;;  %v2675_v59 = vld [vmem:[%s2595_s17 + $0x70] sm:$0xff]  ;;  %v2710_v62 = vld [vmem:[%s3435_s2 + $0xa0] ss:$0 sm:$0xff]  ;;  %s2368_s17 = scalar_lea.vmem %s3386_s6, 2048 }
  0x26   : > { %2248 = vmatpush3.bf16.msra.mxu1 %v2245_v17  ;;  %923 = vperm.xlu1 %2327, %v2606_v37   ;;  %p2369_p11 = scmp.ne.s32.totalorder %s3386_s6, %s2368_s17  ;;  %p2376_p1 = scmp.lt.s32.totalorder %s2374_s10, %s2368_s17 }
  0x27   : > { %2250 = vmatprep.subr.bf16.mxu1 %v2249_v24  ;;  %913 = vperm.xlu0 %2326, %v2609_v38  }
  0x28   : > { %2136 = vmatmul.mubr.msk.f32.gmra.mrb[4].mxu0 %vm253_vm0, %v215_v25  ;;  %2148 = vmatmul.mubr.msk.f32.gmra.mrb[4].mxu1 %vm253_vm0, %v223_v27  ;;  %p2370_p12 = pnand %p2369_p11, %p2501_p5  ;;  %p2377_p2 = por %p2376_p1, %p2375_p0 }
  0x29   : > { %2138 = vmatprep.mubr.msk.f32.mxu0 %vm253_vm0, %v216_v26  ;;  %2150 = vmatprep.mubr.msk.f32.mxu1 %vm253_vm0, %v224_v28 }
  0x2a   : > { %2252 = vmatpush3.bf16.msra.mxu1 %v2249_v24  ;;  %933 = vperm.xlu1 %2327, %v2614_v39   ;;  %p2371_p13 = pneg %p2370_p12 }
  0x2b   : > { %2254 = vmatprep.subr.bf16.mxu1 %v2253_v33  ;;  %928 = vperm.xlu0 %2326, %v2617_v40  }
  0x2c   : > { %2139 = vmatmul.mubr.msk.f32.gmra.mrb[6].mxu0 %vm253_vm0, %v217_v29  ;;  %2151 = vmatmul.mubr.msk.f32.gmra.mrb[6].mxu1 %vm253_vm0, %v225_v30  ;;  %p2378_p3 = pnand %p2377_p2, %p2371_p13 }
  0x2d   : > { %2260 = vmatpush3.bf16.msra.mxu0 %v2257_v44 }
  0x2e   : > { %2256 = vmatpush3.bf16.msra.mxu1 %v2253_v33  ;;  %943 = vperm.xlu1 %2327, %v2634_v46  }
  0x2f   : > { %938 = vperm.xlu0 %2326, %v2637_v47   ;;  %2262 = vmatprep.subr.bf16.mxu0 %v2261_v48 }
  0x31   : > { %2264 = vmatpush3.bf16.msra.mxu0 %v2261_v48 }
  0x32   : > { %953 = vperm.xlu1 %2327, %v2648_v51   ;;  %2266 = vmatprep.subr.bf16.mxu0 %v2265_v53 }
  0x33   : > { %948 = vperm.xlu0 %2326, %v2651_v52  }
  0x35   : > { %2268 = vmatpush3.bf16.msra.mxu0 %v2265_v53 }
  0x36   : > { %963 = vperm.xlu1 %2327, %v2656_v54  }
  0x37   : > { %958 = vperm.xlu0 %2326, %v2659_v55  }
  0x3a   : > { %973 = vperm.xlu1 %2327, %v2664_v56  }
  0x3b   : > { %968 = vperm.xlu0 %2326, %v2667_v57  }
  0x3e   : > { %983 = vperm.xlu1 %2327, %v2672_v58  }
  0x3f   : > { %978 = vperm.xlu0 %2326, %v2675_v59  }
  0x42   : > { %2329 = vset.pattern.permute.xlu1 %v2433_v60 }
  0x43   : > { %2328 = vset.pattern.permute.xlu0 %v2433_v60  ;;  %1087 = vperm.xlu1 %2329, %v2609_v38  }
  0x44   : > { %1083 = vperm.xlu0 %2328, %v2601_v36  }
  0x47   : > { %1091 = vperm.xlu1 %2329, %v2598_v34  }
  0x48   : > { %1095 = vperm.xlu0 %2328, %v2606_v37  }
  0x4b   : > { %1099 = vperm.xlu1 %2329, %v2617_v40  }
  0x4c   : > { %1103 = vperm.xlu0 %2328, %v2614_v39  }
  0x4f   : > { %1107 = vperm.xlu1 %2329, %v2637_v47  }
  0x50   : > { %1111 = vperm.xlu0 %2328, %v2634_v46  }
  0x53   : > { %1115 = vperm.xlu1 %2329, %v2651_v52  }
  0x54   : > { %1119 = vperm.xlu0 %2328, %v2648_v51  }
  0x57   : > { %1123 = vperm.xlu1 %2329, %v2659_v55  }
  0x58   : > { %1127 = vperm.xlu0 %2328, %v2656_v54  }
  0x5b   : > { %1131 = vperm.xlu1 %2329, %v2667_v57  }
  0x5c   : > { %1135 = vperm.xlu0 %2328, %v2664_v56  }
  0x5f   : > { %1139 = vperm.xlu1 %2329, %v2675_v59  }
  0x60   : > { %1143 = vperm.xlu0 %2328, %v2672_v58  }
  0x63   : > { %2330 = vset.pattern.permute.xlu1 %v2434_v61 }
  0x64   : > { %2331 = vset.pattern.permute.xlu0 %v2434_v61  ;;  %1243 = vperm.xlu1 %2330, %v2601_v36  }
  0x65   : > { %1247 = vperm.xlu0 %2331, %v2609_v38  }
  0x68   : > { %1251 = vperm.xlu1 %2330, %v2598_v34  }
  0x69   : > { %1259 = vperm.xlu0 %2331, %v2617_v40  }
  0x6c   : > { %1255 = vperm.xlu1 %2330, %v2606_v37  }
  0x6d   : > { %1267 = vperm.xlu0 %2331, %v2637_v47  }
  0x70   : > { %1263 = vperm.xlu1 %2330, %v2614_v39  }
  0x71   : > { %1275 = vperm.xlu0 %2331, %v2651_v52  }
  0x74   : > { %1271 = vperm.xlu1 %2330, %v2634_v46  }
  0x75   : > { %1283 = vperm.xlu0 %2331, %v2659_v55  }
  0x78   : > { %1279 = vperm.xlu1 %2330, %v2648_v51  }
  0x79   : > { %1291 = vperm.xlu0 %2331, %v2667_v57  }
  0x7c   : > { %1287 = vperm.xlu1 %2330, %v2656_v54  }
  0x7d   : > { %1299 = vperm.xlu0 %2331, %v2675_v59  }
  0x80   : > { %1295 = vperm.xlu1 %2330, %v2664_v56  }
  0x81   : > { %2333 = vset.pattern.permute.xlu0 %v2435_v5 }
  0x82   : > { %1407 = vperm.xlu0 %2333, %v2609_v38  }
  0x84   : > { %1303 = vperm.xlu1 %2330, %v2672_v58  }
  0x86   : > { %1419 = vperm.xlu0 %2333, %v2617_v40  }
  0x88   : > { %2332 = vset.pattern.permute.xlu1 %v2435_v5 }
  0x89   : > { %1403 = vperm.xlu1 %2332, %v2601_v36  }
  0x8a   : > { %1427 = vperm.xlu0 %2333, %v2637_v47  }
  0x8d   : > { %1411 = vperm.xlu1 %2332, %v2598_v34  }
  0x8e   : > { %1435 = vperm.xlu0 %2333, %v2651_v52  }
  0x91   : > { %1415 = vperm.xlu1 %2332, %v2606_v37  }
  0x92   : > { %1443 = vperm.xlu0 %2333, %v2659_v55  }
  0x95   : > { %1423 = vperm.xlu1 %2332, %v2614_v39   ;;  %v244_v39 = vld [vmem:[%s3435_s2 + $0x90] sm:$0xff] }
  0x96   : > { %1451 = vperm.xlu0 %2333, %v2667_v57  }
  0x99   : > { %1431 = vperm.xlu1 %2332, %v2634_v46   ;;  %v245_v46 = vld [vmem:[%s3435_s2 + $0x98] sm:$0xff] }
  0x9a   : > { %1459 = vperm.xlu0 %2333, %v2675_v59   ;;  %v2269_v50 = vpack.c.bf16 %v245_v46, %v244_v39 }
  0x9c   : > { %2270 = vmatprep.subr.bf16.mxu0 %v2269_v50 }
  0x9d   : > { %1439 = vperm.xlu1 %2332, %v2648_v51   ;;  %2272 = vmatpush3.bf16.msra.mxu0 %v2269_v50  ;;  %v2773_v51 = vld [vmem:[%s3435_s2 + $0xa1] ss:$0 sm:$0xff] }
  0xa1   : > { %1447 = vperm.xlu1 %2332, %v2656_v54  }
  0xa5   : > { %1455 = vperm.xlu1 %2332, %v2664_v56  }
  0xa9   : > { %1463 = vperm.xlu1 %2332, %v2672_v58  }
  0xf3   : > { %v2131_v63 = vpop.f32.mrb[0].mxu0  ;;  %v2143_v2 = vpop.f32.mrb[0].mxu1 }
  0xf4   : > { %v374_v0 = vadd.f32 %v2131_v63, %v2710_v62  ;;  %v368_v1 = vpop.f32.mrb[1].mxu0  ;;  %v408_v4 = vpop.f32.mrb[1].mxu1  ;;  %v414_v32 = vadd.f32 %v2143_v2, %v2710_v62 }
  0xf5   : > { %v369_v3 = vadd.f32 %v2710_v62, %v368_v1  ;;  %v409_v25 = vadd.f32 %v2710_v62, %v408_v4 }
  0xf6   : > { %v448_v8 = vmax.f32 %v374_v0, 0.0  ;;  %v456_v38 = vmax.f32 %v414_v32, 0.0 }
  0xf7   : > { %v447_v6 = vmax.f32 %v369_v3, 0.0  ;;  %v2134_v7 = vpop.f32.mrb[2].mxu0  ;;  %v2146_v11 = vpop.f32.mrb[2].mxu1  ;;  %v455_v35 = vmax.f32 %v409_v25, 0.0 }
  0xf8   : > { %v384_v9 = vadd.f32 %v2134_v7, %v2710_v62  ;;  %v378_v10 = vpop.f32.mrb[3].mxu0  ;;  %v418_v13 = vpop.f32.mrb[3].mxu1  ;;  %v424_v40 = vadd.f32 %v2146_v11, %v2710_v62 }
  0xf9   : > { %v379_v12 = vadd.f32 %v2710_v62, %v378_v10  ;;  %2169 = vmatprep.mubr.msk.f32.mxu1 %vm467_vm1, %v447_v6  ;;  %v419_v36 = vadd.f32 %v2710_v62, %v418_v13 }
  0xfa   : > { %v450_v14 = vmax.f32 %v384_v9, 0.0  ;;  %2170 = vmatmul.mubr.msk.f32.vlgmr.msra.gmra.mrb[8].mxu1 %vm467_vm1, %v448_v8  ;;  %v458_v43 = vmax.f32 %v424_v40, 0.0 }
  0xfb   : > { %v449_v15 = vmax.f32 %v379_v12, 0.0  ;;  %v2137_v16 = vpop.f32.mrb[4].mxu0  ;;  %v2149_v19 = vpop.f32.mrb[4].mxu1  ;;  %v457_v41 = vmax.f32 %v419_v36, 0.0 }
  0xfc   : > { %v394_v17 = vadd.f32 %v2137_v16, %v2710_v62  ;;  %v388_v18 = vpop.f32.mrb[5].mxu0  ;;  %v428_v21 = vpop.f32.mrb[5].mxu1  ;;  %v434_v34 = vadd.f32 %v2149_v19, %v2710_v62 }
  0xfd   : > { %v389_v20 = vadd.f32 %v2710_v62, %v388_v18  ;;  %2172 = vmatprep.mubr.msk.f32.mxu1 %vm467_vm1, %v449_v15  ;;  %v429_v42 = vadd.f32 %v2710_v62, %v428_v21 }
  0xfe   : > { %v452_v22 = vmax.f32 %v394_v17, 0.0  ;;  %2173 = vmatmul.mubr.msk.f32.gmra.mrb[10].mxu1 %vm467_vm1, %v450_v14  ;;  %v460_v47 = vmax.f32 %v434_v34, 0.0  ;;  %v2865_v34 = vpop.permute.xlu1 %918 }
  0xff   : > { %v451_v23 = vmax.f32 %v389_v20, 0.0  ;;  %v2140_v24 = vpop.f32.mrb[6].mxu0  ;;  %v2152_v28 = vpop.f32.mrb[6].mxu1  ;;  %v459_v44 = vmax.f32 %v429_v42, 0.0 }
 0x100   : > { %v404_v26 = vadd.f32 %v2140_v24, %v2710_v62  ;;  %v398_v27 = vpop.f32.mrb[7].mxu0  ;;  %v438_v30 = vpop.f32.mrb[7].mxu1  ;;  %v444_v37 = vadd.f32 %v2152_v28, %v2710_v62 }
 0x101   : > { %v399_v29 = vadd.f32 %v2710_v62, %v398_v27  ;;  %2175 = vmatprep.mubr.msk.f32.mxu1 %vm467_vm1, %v451_v23  ;;  %v439_v45 = vadd.f32 %v2710_v62, %v438_v30 }
 0x102   : > { %v454_v31 = vmax.f32 %v404_v26, 0.0  ;;  %2176 = vmatmul.mubr.msk.f32.gmra.mrb[12].mxu1 %vm467_vm1, %v452_v22  ;;  %v462_v49 = vmax.f32 %v444_v37, 0.0 }
 0x103   : > { %v453_v33 = vmax.f32 %v399_v29, 0.0  ;;  %v461_v48 = vmax.f32 %v439_v45, 0.0  ;;  %v909_v45 = vpop.permute.xlu0 %908 }
 0x105   : > { %2178 = vmatprep.mubr.msk.f32.mxu1 %vm467_vm1, %v453_v33 }
 0x106   : > { %2179 = vmatmul.mubr.msk.f32.gmra.mrb[14].mxu1 %vm467_vm1, %v454_v31 }
 0x107   : > { %2181 = vmatprep.mubr.msk.f32.mxu1 %vm467_vm1, %v455_v35  ;;  %v914_v37 = vpop.permute.xlu0 %913 }
 0x10a   : > { %2182 = vmatmul.mubr.msk.f32.gmra.mrb[16].mxu1 %vm467_vm1, %v456_v38 }
 0x10b   : > { %2184 = vmatprep.mubr.msk.f32.mxu1 %vm467_vm1, %v457_v41 }
 0x10e   : > { %2185 = vmatmul.mubr.msk.f32.gmra.mrb[18].mxu1 %vm467_vm1, %v458_v43 }
 0x10f   : > { %2187 = vmatprep.mubr.msk.f32.mxu1 %vm467_vm1, %v459_v44  ;;  %v924_v44 = vpop.permute.xlu1 %923 }
 0x112   : > { %2188 = vmatmul.mubr.msk.f32.gmra.mrb[20].mxu1 %vm467_vm1, %v460_v47 }
 0x113   : > { %2190 = vmatprep.mubr.msk.f32.mxu1 %vm467_vm1, %v461_v48  ;;  %v2867_v47 = vpop.permute.xlu1 %933 }
 0x116   : > { %2191 = vmatmul.mubr.msk.f32.gmra.mrb[22].mxu1 %vm467_vm1, %v462_v49  ;;  %v2871_v49 = vpop.permute.xlu0 %928 }
 0x117   : > { %v2869_v48 = vpop.permute.xlu1 %943 }
 0x11a   : > { %v2875_v46 = vpop.permute.xlu0 %938 }
 0x11b   : > { %v2873_v39 = vpop.permute.xlu1 %953 }
 0x11f   : > { %v2877_v50 = vpop.permute.xlu1 %963 }
 0x1cd   : > { %v2171_v52 = vpop.f32.mrb[8].mxu1 }
 0x1ce   : > { %v2776_v53 = vadd.f32 %v2171_v52, %v2773_v51  ;;  %v582_v54 = vpop.f32.mrb[9].mxu1  ;;  %v2881_v52 = vpop.permute.xlu1 %973 }
 0x1cf   : > { %v2779_v55 = vadd.f32 %v2773_v51, %v582_v54 }
 0x1d0   : > { %v662_v56 = vand.u32 2147483647, %v2776_v53  ;;  %v678_v60 = vmax.f32 %v2776_v53, 0.0 }
 0x1d1   : > { %v677_v57 = vmax.f32 %v2779_v55, 0.0  ;;  %v2174_v58 = vpop.f32.mrb[10].mxu1  ;;  %v661_v59 = vand.u32 2147483647, %v2779_v55 }
 0x1d2   : > { %v2786_v61 = vadd.f32 %v2174_v58, %v2773_v51  ;;  %v592_v62 = vpop.f32.mrb[11].mxu1  ;;  %1596 = vrot.lane.b32.xlu0 %v662_v56, %s2436_s19  ;;  %v2885_v56 = vpop.permute.xlu1 %983 }
 0x1d3   : > { %v2790_v63 = vadd.f32 %v2773_v51, %v592_v62  ;;  %2209 = vmatprep.mubr.msk.f32.mxu0 %vm467_vm1, %v677_v57  ;;  %1594 = vrot.lane.b32.xlu1 %v661_v59, %s2436_s19 }
 0x1d4   : > { %v680_v0 = vmax.f32 %v2786_v61, 0.0  ;;  %2210 = vmatmul.mubr.msk.f32.vlgmr.msra.gmra.mrb[8].mxu0 %vm467_vm1, %v678_v60  ;;  %v664_v1 = vand.u32 2147483647, %v2786_v61 }
 0x1d5   : > { %3459 = vst [vmem:[#allocation5_spill] sm:$0xff] %v2790_v63  ;;  %v679_v2 = vmax.f32 %v2790_v63, 0.0  ;;  %v2177_v3 = vpop.f32.mrb[12].mxu1  ;;  %v663_v4 = vand.u32 2147483647, %v2790_v63 }
 0x1d6   : > { %v2800_v5 = vadd.f32 %v2177_v3, %v2773_v51  ;;  %v602_v6 = vpop.f32.mrb[13].mxu1  ;;  %1600 = vrot.lane.b32.xlu0 %v664_v1, %s2436_s19  ;;  %v1088_v58 = vpop.permute.xlu1 %1087 }
 0x1d7   : > { %v2804_v7 = vadd.f32 %v2773_v51, %v602_v6  ;;  %2212 = vmatprep.mubr.msk.f32.mxu0 %vm467_vm1, %v679_v2  ;;  %1598 = vrot.lane.b32.xlu1 %v663_v4, %s2436_s19 }
 0x1d8   : > { %v682_v8 = vmax.f32 %v2800_v5, 0.0  ;;  %2213 = vmatmul.mubr.msk.f32.gmra.mrb[10].mxu0 %vm467_vm1, %v680_v0 }
 0x1d9   : > { %3460 = vst [vmem:[#allocation6_spill] sm:$0xff] %v2804_v7  ;;  %v681_v9 = vmax.f32 %v2804_v7, 0.0  ;;  %v2180_v10 = vpop.f32.mrb[14].mxu1  ;;  %v665_v11 = vand.u32 2147483647, %v2804_v7 }
 0x1da   : > { %v2813_v12 = vadd.f32 %v2180_v10, %v2773_v51  ;;  %v612_v13 = vpop.f32.mrb[15].mxu1  ;;  %v1092_v60 = vpop.permute.xlu1 %1091 }
 0x1db   : > { %v2816_v14 = vadd.f32 %v2773_v51, %v612_v13  ;;  %2215 = vmatprep.mubr.msk.f32.mxu0 %vm467_vm1, %v681_v9  ;;  %1602 = vrot.lane.b32.xlu1 %v665_v11, %s2436_s19 }
 0x1dc   : > { %v684_v15 = vmax.f32 %v2813_v12, 0.0  ;;  %2216 = vmatmul.mubr.msk.f32.gmra.mrb[12].mxu0 %vm467_vm1, %v682_v8 }
 0x1dd   : > { %v683_v16 = vmax.f32 %v2816_v14, 0.0  ;;  %v2183_v17 = vpop.f32.mrb[16].mxu1 }
 0x1de   : > { %v2824_v18 = vadd.f32 %v2183_v17, %v2773_v51  ;;  %v622_v19 = vpop.f32.mrb[17].mxu1  ;;  %v2891_v0 = vpop.permute.xlu1 %1099 }
 0x1df   : > { %v2827_v20 = vadd.f32 %v2773_v51, %v622_v19  ;;  %2218 = vmatprep.mubr.msk.f32.mxu0 %vm467_vm1, %v683_v16  ;;  %v2916_v16 = vld [vmem:[%s3435_s2 + $0xa2] ss:$0 sm:$0xff] }
 0x1e0   : > { %v686_v21 = vmax.f32 %v2824_v18, 0.0  ;;  %2219 = vmatmul.mubr.msk.f32.gmra.mrb[14].mxu0 %vm467_vm1, %v684_v15 }
 0x1e1   : > { %v685_v22 = vmax.f32 %v2827_v20, 0.0  ;;  %v2186_v23 = vpop.f32.mrb[18].mxu1 }
 0x1e2   : > { %v2834_v24 = vadd.f32 %v2186_v23, %v2773_v51  ;;  %v632_v25 = vpop.f32.mrb[19].mxu1  ;;  %v2893_v2 = vpop.permute.xlu1 %1107 }
 0x1e3   : > { %v2837_v26 = vadd.f32 %v2773_v51, %v632_v25  ;;  %2221 = vmatprep.mubr.msk.f32.mxu0 %vm467_vm1, %v685_v22 }
 0x1e4   : > { %v688_v27 = vmax.f32 %v2834_v24, 0.0  ;;  %2222 = vmatmul.mubr.msk.f32.gmra.mrb[16].mxu0 %vm467_vm1, %v686_v21 }
 0x1e5   : > { %v687_v28 = vmax.f32 %v2837_v26, 0.0  ;;  %v2189_v29 = vpop.f32.mrb[20].mxu1 }
 0x1e6   : > { %v2844_v30 = vadd.f32 %v2189_v29, %v2773_v51  ;;  %v642_v31 = vpop.f32.mrb[21].mxu1  ;;  %v2897_v4 = vpop.permute.xlu1 %1115 }
 0x1e7   : > { %v2847_v32 = vadd.f32 %v2773_v51, %v642_v31  ;;  %2224 = vmatprep.mubr.msk.f32.mxu0 %vm467_vm1, %v687_v28 }
 0x1e8   : > { %v690_v33 = vmax.f32 %v2844_v30, 0.0  ;;  %2225 = vmatmul.mubr.msk.f32.gmra.mrb[18].mxu0 %vm467_vm1, %v688_v27 }
 0x1e9   : > { %v689_v35 = vmax.f32 %v2847_v32, 0.0  ;;  %v2192_v36 = vpop.f32.mrb[22].mxu1 }
 0x1ea   : > { %v2854_v38 = vadd.f32 %v2192_v36, %v2773_v51  ;;  %v652_v40 = vpop.f32.mrb[23].mxu1  ;;  %v2901_v8 = vpop.permute.xlu1 %1123 }
 0x1eb   : > { %v2857_v41 = vadd.f32 %v2773_v51, %v652_v40  ;;  %2227 = vmatprep.mubr.msk.f32.mxu0 %vm467_vm1, %v689_v35  ;;  %v2879_v51 = vpop.permute.xlu0 %948 }
 0x1ec   : > { %v692_v42 = vmax.f32 %v2854_v38, 0.0  ;;  %2228 = vmatmul.mubr.msk.f32.gmra.mrb[20].mxu0 %vm467_vm1, %v690_v33 }
 0x1ed   : > { %3461 = vst [vmem:[#allocation7_spill] sm:$0xff] %v2857_v41  ;;  %v691_v43 = vmax.f32 %v2857_v41, 0.0 }
 0x1ee   : > { %v2905_v10 = vpop.permute.xlu1 %1131 }
 0x1ef   : > { %2230 = vmatprep.mubr.msk.f32.mxu0 %vm467_vm1, %v691_v43  ;;  %v2883_v54 = vpop.permute.xlu0 %958 }
 0x1f0   : > { %2231 = vmatmul.mubr.msk.f32.gmra.mrb[22].mxu0 %vm467_vm1, %v692_v42 }
 0x1f2   : > { %v2909_v13 = vpop.permute.xlu1 %1139 }
 0x1f3   : > { %v2887_v57 = vpop.permute.xlu0 %968 }
 0x1f6   : > { %v1244_v19 = vpop.permute.xlu1 %1243 }
 0x1f7   : > { %v2889_v59 = vpop.permute.xlu0 %978 }
 0x1fa   : > { %v1252_v40 = vpop.permute.xlu1 %1251 }
 0x1fb   : > { %v1084_v62 = vpop.permute.xlu0 %1083 }
 0x1ff   : > { %v1096_v1 = vpop.permute.xlu0 %1095 }
 0x203   : > { %v2895_v3 = vpop.permute.xlu0 %1103 }
 0x207   : > { %v2899_v6 = vpop.permute.xlu0 %1111 }
 0x20b   : > { %v2903_v9 = vpop.permute.xlu0 %1119 }
 0x20f   : > { %v2907_v11 = vpop.permute.xlu0 %1127 }
 0x213   : > { %v2911_v15 = vpop.permute.xlu0 %1135 }
 0x217   : > { %v2921_v23 = vpop.permute.xlu0 %1143 }
 0x21b   : > { %v1248_v42 = vpop.permute.xlu0 %1247 }
 0x2a7   : > { %v2211_v17 = vpop.f32.mrb[8].mxu0 }
 0x2a8   : > { %v2919_v21 = vadd.f32 %v2211_v17, %v2916_v16  ;;  %v811_v22 = vpop.f32.mrb[9].mxu0 }
 0x2a9   : > { %v2924_v25 = vadd.f32 %v2916_v16, %v811_v22 }
 0x2aa   : > { %3462 = vst [vmem:[#allocation8_spill] sm:$0xff] %v2919_v21  ;;  %v2927_v27 = vand.u32 2147483647, %v2919_v21 }
 0x2ab   : > { %3463 = vst [vmem:[#allocation9_spill] sm:$0xff] %v2924_v25  ;;  %v2214_v28 = vpop.f32.mrb[10].mxu0  ;;  %v2930_v29 = vand.u32 2147483647, %v2924_v25  ;;  %v1256_v25 = vpop.permute.xlu1 %1255 }
 0x2ac   : > { %v2933_v31 = vadd.f32 %v2214_v28, %v2916_v16  ;;  %v821_v33 = vpop.f32.mrb[11].mxu0  ;;  %v1147_v35 = vmul.f32 %v1088_v58, %v2927_v27  ;;  %v987_v36 = vmul.f32 %v914_v37, %v2927_v27  ;;  %v1307_v37 = vmul.f32 %v1248_v42, %v2927_v27 }
 0x2ad   : > { %v2943_v22 = vadd.f32 %v2916_v16, %v821_v33  ;;  %v1146_v58 = vmul.f32 %v1084_v62, %v2930_v29  ;;  %v986_v33 = vmul.f32 %v909_v45, %v2930_v29  ;;  %v1306_v7 = vmul.f32 %v1244_v19, %v2930_v29 }
 0x2ae   : > { %3464 = vst [vmem:[#allocation10_spill] sm:$0xff] %v2933_v31  ;;  %1180 = vrot.lane.b32.xlu0 %v1147_v35, %s2437_s25  ;;  %1020 = vrot.lane.b32.xlu1 %v987_v36, %s2438_s26  ;;  %v2940_v17 = vand.u32 2147483647, %v2933_v31 }
 0x2af   : > { %v2217_v43 = vpop.f32.mrb[12].mxu0  ;;  %3465 = vst [vmem:[#allocation11_spill] sm:$0xff] %v2943_v22  ;;  %v2950_v36 = vand.u32 2147483647, %v2943_v22  ;;  %v1264_v22 = vpop.permute.xlu1 %1263 }
 0x2b0   : > { %v831_v28 = vpop.f32.mrb[13].mxu0  ;;  %v989_v31 = vmul.f32 %v924_v44, %v2940_v17  ;;  %v2957_v42 = vadd.f32 %v2217_v43, %v2916_v16 }
 0x2b1   : > { %v1308_v43 = vmul.f32 %v1252_v40, %v2950_v36  ;;  %v1309_v40 = vmul.f32 %v1256_v25, %v2940_v17  ;;  %v988_v25 = vmul.f32 %v2865_v34, %v2950_v36 }
 0x2b2   : > { %1178 = vrot.lane.b32.xlu1 %v1146_v58, %s2437_s25  ;;  %1340 = vrot.lane.b32.xlu0 %v1307_v37, %s2436_s19  ;;  %3466 = vst [vmem:[#allocation12_spill] sm:$0xff] %v2957_v42  ;;  %v1148_v37 = vmul.f32 %v1092_v60, %v2950_v36  ;;  %v2964_v45 = vand.u32 2147483647, %v2957_v42  ;;  %v1149_v60 = vmul.f32 %v1096_v1, %v2940_v17 }
 0x2b3   : > { %v2220_v35 = vpop.f32.mrb[14].mxu0 }
 0x2b4   : > { %v841_v21 = vpop.f32.mrb[15].mxu0  ;;  %v991_v63 = vmul.f32 %v2867_v47, %v2964_v45 }
 0x2b6   : > { %1024 = vrot.lane.b32.xlu1 %v989_v31, %s2438_s26  ;;  %1018 = vrot.lane.b32.xlu0 %v986_v33, %s2438_s26  ;;  %v2967_v31 = vadd.f32 %v2916_v16, %v831_v28 }
 0x2b7   : > { %v2223_v62 = vpop.f32.mrb[16].mxu0 }
 0x2b8   : > { %v851_v58 = vpop.f32.mrb[17].mxu0  ;;  %3467 = vst [vmem:[#allocation13_spill] sm:$0xff] %v2967_v31 }
 0x2ba   : > { %1182 = vrot.lane.b32.xlu1 %v1148_v37, %s2437_s25  ;;  %1338 = vrot.lane.b32.xlu0 %v1306_v7, %s2436_s19  ;;  %v1272_v37 = vpop.permute.xlu1 %1271  ;;  %v2976_v7 = vand.u32 2147483647, %v2967_v31 }
 0x2bb   : > { %v2226_v44 = vpop.f32.mrb[18].mxu0 }
 0x2bc   : > { %v2969_v33 = vpop.f32.mrb[19].mxu0  ;;  %v1150_v47 = vmul.f32 %v2891_v0, %v2976_v7  ;;  %v1151_v0 = vmul.f32 %v2895_v3, %v2964_v45 }
 0x2be   : > { %1342 = vrot.lane.b32.xlu1 %v1308_v43, %s2436_s19  ;;  %1184 = vrot.lane.b32.xlu0 %v1149_v60, %s2437_s25  ;;  %v2990_v60 = vadd.f32 %v2220_v35, %v2916_v16  ;;  %v1260_v35 = vpop.permute.xlu0 %1259 }
 0x2bf   : > { %v2229_v19 = vpop.f32.mrb[20].mxu0  ;;  %v1310_v34 = vmul.f32 %v1260_v35, %v2976_v7  ;;  %v990_v35 = vmul.f32 %v2871_v49, %v2976_v7 }
 0x2c0   : > { %v2979_v42 = vadd.f32 %v2229_v19, %v2916_v16  ;;  %v871_v28 = vpop.f32.mrb[21].mxu0  ;;  %3470 = vst [vmem:[#allocation16_spill] sm:$0xff] %v2990_v60 }
 0x2c1   : > { %v2985_v1 = vadd.f32 %v2916_v16, %v871_v28 }
 0x2c2   : > { %3468 = vst [vmem:[#allocation14_spill] sm:$0xff] %v2979_v42  ;;  %1028 = vrot.lane.b32.xlu1 %v991_v63, %s2438_s26  ;;  %1344 = vrot.lane.b32.xlu0 %v1309_v40, %s2436_s19  ;;  %v1280_v63 = vpop.permute.xlu1 %1279  ;;  %v3005_v40 = vand.u32 2147483647, %v2990_v60  ;;  %v1268_v3 = vpop.permute.xlu0 %1267 }
 0x2c3   : > { %3469 = vst [vmem:[#allocation15_spill] sm:$0xff] %v2985_v1  ;;  %v2232_v43 = vpop.f32.mrb[22].mxu0 }
 0x2c4   : > { %v2993_v19 = vadd.f32 %v2232_v43, %v2916_v16  ;;  %v881_v31 = vpop.f32.mrb[23].mxu0  ;;  %v3008_v43 = vadd.f32 %v2916_v16, %v841_v21  ;;  %v993_v60 = vmul.f32 %v2869_v48, %v3005_v40  ;;  %v3024_v21 = vadd.f32 %v2223_v62, %v2916_v16 }
 0x2c5   : > { %v3000_v28 = vadd.f32 %v2916_v16, %v881_v31  ;;  %v1153_v62 = vmul.f32 %v2899_v6, %v3005_v40 }
 0x2c6   : > { %3471 = vst [vmem:[#allocation17_spill] sm:$0xff] %v2993_v19  ;;  %1186 = vrot.lane.b32.xlu1 %v1150_v47, %s2437_s25  ;;  %1022 = vrot.lane.b32.xlu0 %v988_v25, %s2438_s26  ;;  %3473 = vst [vmem:[#allocation19_spill] sm:$0xff] %v3008_v43  ;;  %v1288_v31 = vpop.permute.xlu1 %1287  ;;  %v3016_v47 = vand.u32 2147483647, %v3008_v43  ;;  %v1311_v25 = vmul.f32 %v1264_v22, %v2964_v45  ;;  %v3035_v48 = vand.u32 2147483647, %v3024_v21 }
 0x2c7   : > { %3472 = vst [vmem:[#allocation18_spill] sm:$0xff] %v3000_v28  ;;  %3474 = vst [vmem:[#allocation20_spill] sm:$0xff] %v3024_v21  ;;  %v3038_v22 = vadd.f32 %v2916_v16, %v851_v58 }
 0x2c8   : > { %v1312_v49 = vmul.f32 %v1268_v3, %v3016_v47  ;;  %v995_v58 = vmul.f32 %v2873_v39, %v3035_v48  ;;  %v3056_v3 = vadd.f32 %v2226_v44, %v2916_v16  ;;  %v1155_v44 = vmul.f32 %v2903_v9, %v3035_v48 }
 0x2c9   : > { %3475 = vst [vmem:[#allocation21_spill] sm:$0xff] %v3038_v22 }
 0x2ca   : > { %1188 = vrot.lane.b32.xlu0 %v1151_v0, %s2437_s25  ;;  %1346 = vrot.lane.b32.xlu1 %v1310_v34, %s2436_s19  ;;  %v1152_v0 = vmul.f32 %v2893_v2, %v3016_v47  ;;  %v3030_v34 = vpop.permute.xlu1 %1295  ;;  %3476 = vst [vmem:[#allocation22_spill] sm:$0xff] %v3056_v3  ;;  %v3067_v39 = vand.u32 2147483647, %v3056_v3 }
 0x2ce   : > { %1348 = vrot.lane.b32.xlu0 %v1311_v25, %s2436_s19  ;;  %1032 = vrot.lane.b32.xlu1 %v993_v60, %s2438_s26  ;;  %v1276_v60 = vpop.permute.xlu0 %1275  ;;  %v3045_v2 = vpop.permute.xlu1 %1303  ;;  %v3048_v25 = vand.u32 2147483647, %v3038_v22 }
 0x2d2   : > { %1026 = vrot.lane.b32.xlu0 %v990_v35, %s2438_s26  ;;  %1190 = vrot.lane.b32.xlu1 %v1152_v0, %s2437_s25  ;;  %v1313_v35 = vmul.f32 %v1272_v37, %v3005_v40  ;;  %v1284_v6 = vpop.permute.xlu0 %1283  ;;  %v992_v0 = vmul.f32 %v2875_v46, %v3016_v47  ;;  %v3071_v37 = vadd.f32 %v2916_v16, %v2969_v33 }
 0x2d3   : > { %v1314_v46 = vmul.f32 %v1276_v60, %v3048_v25  ;;  %v997_v16 = vmul.f32 %v2877_v50, %v3067_v39  ;;  %v994_v33 = vmul.f32 %v2879_v51, %v3048_v25  ;;  %v1157_v50 = vmul.f32 %v2907_v11, %v3067_v39 }
 0x2d4   : > { %3477 = vst [vmem:[#allocation23_spill] sm:$0xff] %v3071_v37 }
 0x2d6   : > { %1192 = vrot.lane.b32.xlu0 %v1153_v62, %s2437_s25  ;;  %1350 = vrot.lane.b32.xlu1 %v1312_v49, %s2436_s19  ;;  %v1154_v62 = vmul.f32 %v2897_v4, %v3048_v25  ;;  %v3062_v49 = vpop.permute.xlu1 %1403 }
 0x2da   : > { %1352 = vrot.lane.b32.xlu0 %v1313_v35, %s2436_s19  ;;  %1036 = vrot.lane.b32.xlu1 %v995_v58, %s2438_s26  ;;  %v1292_v35 = vpop.permute.xlu0 %1291  ;;  %v3078_v4 = vpop.permute.xlu1 %1411  ;;  %v3081_v58 = vand.u32 2147483647, %v3071_v37 }
 0x2dc   : > { %v1156_v60 = vmul.f32 %v2901_v8, %v3081_v58  ;;  %v3109_v8 = vand.u32 2147483647, %v2985_v1 }
 0x2de   : > { %1030 = vrot.lane.b32.xlu0 %v992_v0, %s2438_s26  ;;  %1194 = vrot.lane.b32.xlu1 %v1154_v62, %s2437_s25  ;;  %v1315_v0 = vmul.f32 %v1280_v63, %v3035_v48  ;;  %v1300_v9 = vpop.permute.xlu0 %1299  ;;  %v3092_v62 = vpop.permute.xlu1 %1415  ;;  %v3097_v63 = vand.u32 2147483647, %v2979_v42 }
 0x2e2   : > { %1196 = vrot.lane.b32.xlu0 %v1155_v44, %s2437_s25  ;;  %1354 = vrot.lane.b32.xlu1 %v1314_v46, %s2436_s19  ;;  %v1316_v44 = vmul.f32 %v1284_v6, %v3081_v58  ;;  %v3102_v46 = vpop.permute.xlu0 %1407  ;;  %v3106_v51 = vpop.permute.xlu1 %1423  ;;  %v996_v6 = vmul.f32 %v2883_v54, %v3081_v58 }
 0x2e3   : > { %v1467_v22 = vmul.f32 %v3102_v46, %v2927_v27 }
 0x2e6   : > { %1356 = vrot.lane.b32.xlu0 %v1315_v0, %s2436_s19  ;;  %1040 = vrot.lane.b32.xlu1 %v997_v16, %s2438_s26  ;;  %v1317_v0 = vmul.f32 %v1288_v31, %v3067_v39  ;;  %v999_v16 = vmul.f32 %v2881_v52, %v3097_v63  ;;  %v3116_v11 = vpop.permute.xlu0 %1419  ;;  %v3127_v52 = vand.u32 2147483647, %v2993_v19  ;;  %v1159_v31 = vmul.f32 %v2911_v15, %v3097_v63 }
 0x2ea   : > { %1034 = vrot.lane.b32.xlu0 %v994_v33, %s2438_s26  ;;  %1198 = vrot.lane.b32.xlu1 %v1156_v60, %s2437_s25  ;;  %v1158_v33 = vmul.f32 %v2905_v10, %v3109_v8  ;;  %v3122_v60 = vpop.permute.xlu1 %1431  ;;  %v3139_v10 = vand.u32 2147483647, %v3000_v28 }
 0x2ec   : > { %3478 = vst [vmem:[#allocation24_spill] sm:$0xff] %v3139_v10 }
 0x2ee   : > { %1200 = vrot.lane.b32.xlu0 %v1157_v50, %s2437_s25  ;;  %1358 = vrot.lane.b32.xlu1 %v1316_v44, %s2436_s19  ;;  %v1318_v50 = vmul.f32 %v1292_v35, %v3109_v8  ;;  %v3132_v44 = vpop.permute.xlu0 %1427  ;;  %v3136_v54 = vpop.permute.xlu1 %1439  ;;  %v998_v35 = vmul.f32 %v2887_v57, %v3109_v8  ;;  %v667_v57 = vand.u32 2147483647, %v2816_v14 }
 0x2f2   : > { %1360 = vrot.lane.b32.xlu0 %v1317_v0, %s2436_s19  ;;  %1044 = vrot.lane.b32.xlu1 %v999_v16, %s2438_s26  ;;  %v1319_v0 = vmul.f32 %v3030_v34, %v3097_v63  ;;  %v1001_v16 = vmul.f32 %v2885_v56, %v3127_v52  ;;  %v3147_v15 = vpop.permute.xlu0 %1435  ;;  %v1161_v56 = vmul.f32 %v2921_v23, %v3127_v52  ;;  %v669_v23 = vand.u32 2147483647, %v2827_v20 }
 0x2f3   : > { %v1320_v34 = vmul.f32 %v1300_v9, %v3139_v10 }
 0x2f6   : > { %1038 = vrot.lane.b32.xlu0 %v996_v6, %s2438_s26  ;;  %1202 = vrot.lane.b32.xlu1 %v1158_v33, %s2437_s25  ;;  %v1160_v6 = vmul.f32 %v2909_v13, %v3139_v10  ;;  %v3153_v33 = vpop.permute.xlu1 %1447 }
 0x2fa   : > { %1204 = vrot.lane.b32.xlu0 %v1159_v31, %s2437_s25  ;;  %1362 = vrot.lane.b32.xlu1 %v1318_v50, %s2436_s19  ;;  %v3160_v31 = vpop.permute.xlu0 %1443  ;;  %v3165_v13 = vpop.permute.xlu1 %1455  ;;  %v1321_v50 = vmul.f32 %v3045_v2, %v3127_v52  ;;  %v671_v2 = vand.u32 2147483647, %v2837_v26 }
 0x2fe   : > { %1364 = vrot.lane.b32.xlu0 %v1319_v0, %s2436_s19  ;;  %1048 = vrot.lane.b32.xlu1 %v1001_v16, %s2438_s26  ;;  %v3172_v9 = vpop.permute.xlu0 %1451  ;;  %v1000_v0 = vmul.f32 %v2889_v59, %v3139_v10  ;;  %v3176_v16 = vpop.permute.xlu1 %1463  ;;  %v673_v59 = vand.u32 2147483647, %v2847_v32 }
 0x2ff   : > { %3479 = vst [vmem:[#allocation25_spill] sm:$0xff] %v3176_v16 }
 0x302   : > { %1042 = vrot.lane.b32.xlu0 %v998_v35, %s2438_s26  ;;  %1206 = vrot.lane.b32.xlu1 %v1160_v6, %s2437_s25  ;;  %v666_v35 = vand.u32 2147483647, %v2800_v5  ;;  %v3182_v6 = vpop.permute.xlu0 %1459 }
 0x303   : > { %3480 = vst [vmem:[#allocation26_spill] sm:$0xff] %v3182_v6 }
 0x306   : > { %1208 = vrot.lane.b32.xlu0 %v1161_v56, %s2437_s25  ;;  %1366 = vrot.lane.b32.xlu1 %v1320_v34, %s2436_s19  ;;  %v668_v56 = vand.u32 2147483647, %v2813_v12  ;;  %v3188_v34 = vpop.permute.xlu1 %1594 }
 0x30a   : > { %1368 = vrot.lane.b32.xlu0 %v1321_v50, %s2436_s19  ;;  %1606 = vrot.lane.b32.xlu1 %v667_v57, %s2436_s19  ;;  %v670_v57 = vand.u32 2147483647, %v2824_v18  ;;  %v675_v50 = vand.u32 2147483647, %v2857_v41 }
 0x30e   : > { %1046 = vrot.lane.b32.xlu0 %v1000_v0, %s2438_s26  ;;  %1610 = vrot.lane.b32.xlu1 %v669_v23, %s2436_s19  ;;  %v1597_v23 = vpop.permute.xlu0 %1596  ;;  %v3194_v0 = vpop.permute.xlu1 %1598 }
 0x312   : > { %1604 = vrot.lane.b32.xlu0 %v666_v35, %s2436_s19  ;;  %1614 = vrot.lane.b32.xlu1 %v671_v2, %s2436_s19  ;;  %v672_v35 = vand.u32 2147483647, %v2834_v24  ;;  %v3199_v2 = vpop.permute.xlu0 %1600  ;;  %v3201_v28 = vpop.permute.xlu1 %1602 }
 0x316   : > { %1608 = vrot.lane.b32.xlu0 %v668_v56, %s2436_s19  ;;  %1618 = vrot.lane.b32.xlu1 %v673_v59, %s2436_s19  ;;  %v674_v56 = vand.u32 2147483647, %v2844_v30 }
 0x31a   : > { %1612 = vrot.lane.b32.xlu0 %v670_v57, %s2436_s19  ;;  %1622 = vrot.lane.b32.xlu1 %v675_v50, %s2436_s19  ;;  %v676_v57 = vand.u32 2147483647, %v2854_v38 }
 0x31e   : > { %1616 = vrot.lane.b32.xlu0 %v672_v35, %s2436_s19 }
 0x320   : > { %v1021_v59 = vpop.permute.xlu1 %1020  ;;  %v1181_v1 = vpop.permute.xlu0 %1180 }
 0x321   : > { %v1067_v19 = vadd.f32 %v1021_v59, %v2776_v53 }
 0x322   : > { %1620 = vrot.lane.b32.xlu0 %v674_v56, %s2436_s19 }
 0x323   : > { %v1227_v37 = vadd.f32 %v1181_v1, %v1067_v19  ;;  %v1466_v19 = vmul.f32 %v3062_v49, %v2930_v29 }
 0x324   : > { %v1179_v50 = vpop.permute.xlu1 %1178  ;;  %v1341_v42 = vpop.permute.xlu0 %1340 }
 0x325   : > { %v1387_v3 = vadd.f32 %v1341_v42, %v1227_v37 }
 0x326   : > { %1624 = vrot.lane.b32.xlu0 %v676_v57, %s2436_s19 }
 0x327   : > { %v1483_v35 = vadd.f32 %v1467_v22, %v1387_v3 }
 0x328   : > { %v1025_v43 = vpop.permute.xlu1 %1024  ;;  %v1019_v21 = vpop.permute.xlu0 %1018 }
 0x329   : > { %v1516_v6 = vmul.f32 1.442695, %v1483_v35  ;;  %v1066_v10 = vadd.f32 %v1019_v21, %v2779_v55  ;;  %v1069_v42 = vadd.f32 %v1025_v43, %v2786_v61  ;;  %v1469_v21 = vmul.f32 %v3092_v62, %v2940_v17 }
 0x32a   : > { %vm1499_vm2 = vcmp.gt.f32.partialorder %v1483_v35, 0.0  ;;  %v1468_v62 = vmul.f32 %v3078_v4, %v2950_v36 }
 0x32b   : > { %2336 = vpow2.f32 %v1516_v6  ;;  %v1226_v53 = vadd.f32 %v1179_v50, %v1066_v10 }
 0x32c   : > { %v1183_v56 = vpop.permute.xlu1 %1182  ;;  %v1339_v1 = vpop.permute.xlu0 %1338 }
 0x32d   : > { %v1386_v59 = vadd.f32 %v1339_v1, %v1226_v53  ;;  %v3481_v1 = vld [vmem:[#allocation5_spill] sm:$0xff] }
 0x32f   : > { %v1482_v41 = vadd.f32 %v1466_v19, %v1386_v59 }
 0x330   : > { %v1343_v16 = vpop.permute.xlu1 %1342  ;;  %v1185_v27 = vpop.permute.xlu0 %1184 }
 0x331   : > { %v1514_v37 = vmul.f32 1.442695, %v1482_v41  ;;  %v1229_v22 = vadd.f32 %v1185_v27, %v1069_v42  ;;  %vm1498_vm3 = vcmp.gt.f32.partialorder %v1482_v41, 0.0 }
 0x333   : > { %2338 = vpow2.f32 %v1514_v37 }
 0x334   : > { %v3215_v3 = vpop.permute.xlu1 %1028  ;;  %v1345_v46 = vpop.permute.xlu0 %1344 }
 0x335   : > { %v2337_v55 = vpop.eup %2336  ;;  %v1389_v10 = vadd.f32 %v1345_v46, %v1229_v22 }
 0x336   : > { %v2032_v6 = vadd.f32 -1.0, %v2337_v55 }
 0x337   : > { %v1485_v29 = vadd.f32 %v1469_v21, %v1389_v10 }
 0x338   : > { %v1563_v49 = vsel %vm1499_vm2, %v1483_v35, %v2032_v6  ;;  %v1187_v57 = vpop.permute.xlu1 %1186  ;;  %v1023_v50 = vpop.permute.xlu0 %1022  ;;  %vm1722_vm2 = vcmask 64512  }
 0x339   : > { %v1520_v53 = vmul.f32 1.442695, %v1485_v29  ;;  %v1068_v61 = vadd.f32 %v1023_v50, %v3481_v1  ;;  %v1643_v43 = vmul.f32 %v1597_v23, %v1563_v49  ;;  %v3482_v49 = vld [vmem:[#allocation6_spill] sm:$0xff]  ;;  %vm1501_vm4 = vcmp.gt.f32.partialorder %v1485_v29, 0.0 }
 0x33b   : > { %2340 = vpow2.f32 %v1520_v53  ;;  %v1228_v19 = vadd.f32 %v1183_v56, %v1068_v61  ;;  %1676 = vrot.lane.b32.xlu0 %v1643_v43, %s2439_s27 }
 0x33c   : > { %v1347_v59 = vpop.permute.xlu1 %1346  ;;  %v3221_v27 = vpop.permute.xlu0 %1188 }
 0x33d   : > { %v2339_v17 = vpop.eup %2338  ;;  %v1388_v42 = vadd.f32 %v1343_v16, %v1228_v19 }
 0x33e   : > { %v2031_v35 = vadd.f32 -1.0, %v2339_v17 }
 0x33f   : > { %v1484_v37 = vadd.f32 %v1468_v62, %v1388_v42 }
 0x340   : > { %v1562_v22 = vsel %vm1498_vm3, %v1482_v41, %v2031_v35  ;;  %v1033_v46 = vpop.permute.xlu1 %1032  ;;  %v1349_v55 = vpop.permute.xlu0 %1348  ;;  %v1470_v41 = vmul.f32 %v3116_v11, %v2976_v7 }
 0x341   : > { %v1518_v23 = vmul.f32 1.442695, %v1484_v37  ;;  %v1642_v56 = vmul.f32 %v3188_v34, %v1562_v22  ;;  %vm1500_vm5 = vcmp.gt.f32.partialorder %v1484_v37, 0.0 }
 0x343   : > { %2342 = vpow2.f32 %v1518_v23  ;;  %1674 = vrot.lane.b32.xlu1 %v1642_v56, %s2439_s27 }
 0x344   : > { %v1191_v21 = vpop.permute.xlu1 %1190  ;;  %v1027_v10 = vpop.permute.xlu0 %1026 }
 0x345   : > { %v2341_v6 = vpop.eup %2340  ;;  %v1070_v50 = vadd.f32 %v1027_v10, %v3482_v49 }
 0x346   : > { %v2034_v53 = vadd.f32 -1.0, %v2341_v6 }
 0x347   : > { %v1230_v36 = vadd.f32 %v1187_v57, %v1070_v50 }
 0x348   : > { %v1565_v4 = vsel %vm1501_vm4, %v1485_v29, %v2034_v53  ;;  %v1351_v16 = vpop.permute.xlu1 %1350  ;;  %v1193_v1 = vpop.permute.xlu0 %1192 }
 0x349   : > { %v1390_v61 = vadd.f32 %v1347_v59, %v1230_v36  ;;  %v1645_v34 = vmul.f32 %v3199_v2, %v1565_v4 }
 0x34b   : > { %v1486_v43 = vadd.f32 %v1470_v41, %v1390_v61  ;;  %1680 = vrot.lane.b32.xlu0 %v1645_v34, %s2439_s27 }
 0x34c   : > { %v1037_v19 = vpop.permute.xlu1 %1036  ;;  %v1353_v17 = vpop.permute.xlu0 %1352 }
 0x34d   : > { %v2343_v62 = vpop.eup %2342  ;;  %v1522_v42 = vmul.f32 1.442695, %v1486_v43  ;;  %vm1502_vm6 = vcmp.gt.f32.partialorder %v1486_v43, 0.0 }
 0x34e   : > { %v2033_v35 = vadd.f32 -1.0, %v2343_v62 }
 0x34f   : > { %2344 = vpow2.f32 %v1522_v42 }
 0x350   : > { %v1195_v57 = vpop.permute.xlu1 %1194  ;;  %v1031_v29 = vpop.permute.xlu0 %1030  ;;  %v1564_v22 = vsel %vm1500_vm5, %v1484_v37, %v2033_v35 }
 0x351   : > { %v1644_v23 = vmul.f32 %v3194_v0, %v1564_v22  ;;  %v1072_v2 = vadd.f32 %v1031_v29, %v2816_v14  ;;  %v1472_v14 = vmul.f32 %v3132_v44, %v3016_v47 }
 0x353   : > { %1678 = vrot.lane.b32.xlu1 %v1644_v23, %s2439_s27  ;;  %v1232_v49 = vadd.f32 %v1191_v21, %v1072_v2  ;;  %v1071_v21 = vadd.f32 %v3215_v3, %v2800_v5  ;;  %v1471_v5 = vmul.f32 %v3106_v51, %v2964_v45  ;;  %v1473_v2 = vmul.f32 %v3122_v60, %v3005_v40 }
 0x354   : > { %v1355_v7 = vpop.permute.xlu1 %1354  ;;  %v1197_v11 = vpop.permute.xlu0 %1196  ;;  %v1475_v40 = vmul.f32 %v3136_v54, %v3035_v48 }
 0x355   : > { %v1392_v0 = vadd.f32 %v1351_v16, %v1232_v49 }
 0x357   : > { %v3242_v42 = vadd.f32 %v1472_v14, %v1392_v0 }
 0x358   : > { %v1041_v59 = vpop.permute.xlu1 %1040  ;;  %v1357_v56 = vpop.permute.xlu0 %1356 }
 0x359   : > { %v2345_v10 = vpop.eup %2344  ;;  %v1526_v29 = vmul.f32 1.442695, %v3242_v42  ;;  %vm1504_vm7 = vcmp.gt.f32.partialorder %v3242_v42, 0.0 }
 0x35a   : > { %v2035_v6 = vadd.f32 -1.0, %v2345_v10  ;;  %v1077_v10 = vadd.f32 %v1041_v59, %v2834_v24  ;;  %v1477_v59 = vmul.f32 %v3153_v33, %v3067_v39  ;;  %v1479_v39 = vmul.f32 %v3165_v13, %v3097_v63 }
 0x35b   : > { %2346 = vpow2.f32 %v1526_v29 }
 0x35c   : > { %v1199_v50 = vpop.permute.xlu1 %1198  ;;  %v1035_v53 = vpop.permute.xlu0 %1034  ;;  %v1566_v36 = vsel %vm1502_vm6, %v1486_v43, %v2035_v6  ;;  %v1231_v43 = vadd.f32 %v3221_v27, %v1071_v21 }
 0x35d   : > { %v1074_v4 = vadd.f32 %v1035_v53, %v2827_v20  ;;  %v1646_v37 = vmul.f32 %v3201_v28, %v1566_v36  ;;  %v1474_v28 = vmul.f32 %v3147_v15, %v3048_v25 }
 0x35e   : > { %v1391_v16 = vadd.f32 %v1349_v55, %v1231_v43 }
 0x35f   : > { %v1234_v41 = vadd.f32 %v1195_v57, %v1074_v4  ;;  %1682 = vrot.lane.b32.xlu1 %v1646_v37, %s2439_s27  ;;  %v1073_v57 = vadd.f32 %v1033_v46, %v2813_v12 }
 0x360   : > { %v1359_v61 = vpop.permute.xlu1 %1358  ;;  %v1201_v34 = vpop.permute.xlu0 %1200  ;;  %v3254_v23 = vadd.f32 %v1471_v5, %v1391_v16  ;;  %v3483_v5 = vld [vmem:[#allocation25_spill] sm:$0xff] }
 0x361   : > { %v1394_v62 = vadd.f32 %v1355_v7, %v1234_v41  ;;  %v1233_v3 = vadd.f32 %v1193_v1, %v1073_v57  ;;  %v1075_v7 = vadd.f32 %v1037_v19, %v2824_v18  ;;  %v1476_v1 = vmul.f32 %v3160_v31, %v3081_v58 }
 0x362   : > { %v1237_v6 = vadd.f32 %v1201_v34, %v1077_v10  ;;  %vm1503_vm9 = vcmp.gt.f32.partialorder %v3254_v23, 0.0 }
 0x363   : > { %v3249_v22 = vadd.f32 %v1474_v28, %v1394_v62  ;;  %v1393_v25 = vadd.f32 %v1353_v17, %v1233_v3  ;;  %v1235_v45 = vadd.f32 %v1197_v11, %v1075_v7 }
 0x364   : > { %v1045_v20 = vpop.permute.xlu1 %1044  ;;  %v1361_v35 = vpop.permute.xlu0 %1360 }
 0x365   : > { %v1530_v12 = vmul.f32 1.442695, %v3249_v22  ;;  %v3264_v18 = vadd.f32 %v1473_v2, %v1393_v25  ;;  %v1395_v19 = vadd.f32 %v1357_v56, %v1235_v45  ;;  %v1397_v58 = vadd.f32 %v1361_v35, %v1237_v6  ;;  %v2347_v36 = vpop.eup %2346 }
 0x366   : > { %v1079_v24 = vadd.f32 %v1045_v20, %v2844_v30  ;;  %v2037_v30 = vadd.f32 -1.0, %v2347_v36  ;;  %vm1506_vm8 = vcmp.gt.f32.partialorder %v3249_v22, 0.0 }
 0x367   : > { %2348 = vpow2.f32 %v1530_v12  ;;  %v1528_v31 = vmul.f32 1.442695, %v3264_v18  ;;  %v3272_v11 = vadd.f32 %v1475_v40, %v1395_v19  ;;  %v3278_v54 = vadd.f32 %v1477_v59, %v1397_v58  ;;  %v3485_v40 = vld [vmem:[#allocation24_spill] sm:$0xff] }
 0x368   : > { %v1203_v47 = vpop.permute.xlu1 %1202  ;;  %v1039_v44 = vpop.permute.xlu0 %1038  ;;  %vm1505_vm11 = vcmp.gt.f32.partialorder %v3264_v18, 0.0 }
 0x369   : > { %v1076_v27 = vadd.f32 %v1039_v44, %v2837_v26  ;;  %v1524_v26 = vmul.f32 1.442695, %v3254_v23  ;;  %v1532_v37 = vmul.f32 1.442695, %v3272_v11  ;;  %v1536_v62 = vmul.f32 1.442695, %v3278_v54 }
 0x36a   : > { %vm1507_vm13 = vcmp.gt.f32.partialorder %v3272_v11, 0.0  ;;  %vm1509_vm14 = vcmp.gt.f32.partialorder %v3278_v54, 0.0 }
 0x36b   : > { %v1236_v15 = vadd.f32 %v1199_v50, %v1076_v27  ;;  %2350 = vpow2.f32 %v1524_v26 }
 0x36c   : > { %v1363_v46 = vpop.permute.xlu1 %1362  ;;  %v1205_v55 = vpop.permute.xlu0 %1204 }
 0x36d   : > { %v1396_v51 = vadd.f32 %v1359_v61, %v1236_v15  ;;  %v1239_v4 = vadd.f32 %v1205_v55, %v1079_v24 }
 0x36f   : > { %v3266_v17 = vadd.f32 %v1476_v1, %v1396_v51 }
 0x370   : > { %v1049_v49 = vpop.permute.xlu1 %1048  ;;  %v1365_v50 = vpop.permute.xlu0 %1364 }
 0x371   : > { %v1534_v60 = vmul.f32 1.442695, %v3266_v17  ;;  %v1399_v0 = vadd.f32 %v1365_v50, %v1239_v4  ;;  %v2349_v14 = vpop.eup %2348  ;;  %v1081_v21 = vadd.f32 %v1049_v49, %v2854_v38  ;;  %v1568_v38 = vsel %vm1504_vm7, %v3242_v42, %v2037_v30 }
 0x372   : > { %v2039_v29 = vadd.f32 -1.0, %v2349_v14  ;;  %vm1508_vm10 = vcmp.gt.f32.partialorder %v3266_v17, 0.0 }
 0x373   : > { %2352 = vpow2.f32 %v1534_v60  ;;  %v3288_v43 = vadd.f32 %v1479_v39, %v1399_v0  ;;  %v3486_v60 = vld [vmem:[#allocation26_spill] sm:$0xff] }
 0x374   : > { %v1207_v56 = vpop.permute.xlu1 %1206  ;;  %v1043_v53 = vpop.permute.xlu0 %1042  ;;  %2354 = vpow2.f32 %v1528_v31  ;;  %v1570_v27 = vsel %vm1506_vm8, %v3249_v22, %v2039_v29  ;;  %v1480_v58 = vmul.f32 %v3486_v60, %v3485_v40 }
 0x375   : > { %v1078_v48 = vadd.f32 %v1043_v53, %v2847_v32  ;;  %v1478_v32 = vmul.f32 %v3172_v9, %v3109_v8  ;;  %2356 = vpow2.f32 %v1532_v37  ;;  %v2351_v28 = vpop.eup %2350  ;;  %v1481_v8 = vmul.f32 %v3483_v5, %v3127_v52 }
 0x376   : > { %2358 = vpow2.f32 %v1536_v62  ;;  %v1540_v44 = vmul.f32 1.442695, %v3288_v43  ;;  %v2036_v15 = vadd.f32 -1.0, %v2351_v28  ;;  %vm1511_vm15 = vcmp.gt.f32.partialorder %v3288_v43, 0.0 }
 0x377   : > { %v1238_v41 = vadd.f32 %v1203_v47, %v1078_v48 }
 0x378   : > { %v1367_v61 = vpop.permute.xlu1 %1366  ;;  %v1209_v34 = vpop.permute.xlu0 %1208  ;;  %v1567_v1 = vsel %vm1503_vm9, %v3254_v23, %v2036_v15 }
 0x379   : > { %v1398_v33 = vadd.f32 %v1363_v46, %v1238_v41  ;;  %v1241_v20 = vadd.f32 %v1209_v34, %v1081_v21  ;;  %v3484_v46 = vld [vmem:[#allocation7_spill] sm:$0xff] }
 0x37b   : > { %v1494_v35 = vadd.f32 %v1478_v32, %v1398_v33 }
 0x37c   : > { %v1607_v16 = vpop.permute.xlu1 %1606  ;;  %v1369_v57 = vpop.permute.xlu0 %1368 }
 0x37d   : > { %v2353_v63 = vpop.eup %2352  ;;  %v1648_v13 = vmul.f32 %v1607_v16, %v1568_v38  ;;  %v1401_v9 = vadd.f32 %v1369_v57, %v1241_v20  ;;  %v1538_v47 = vmul.f32 1.442695, %v1494_v35  ;;  %vm1510_vm12 = vcmp.gt.f32.partialorder %v1494_v35, 0.0 }
 0x37e   : > { %v2041_v25 = vadd.f32 -1.0, %v2353_v63  ;;  %v2355_v12 = vpop.eup %2354 }
 0x37f   : > { %v3294_v3 = vadd.f32 %v1481_v8, %v1401_v9  ;;  %1686 = vrot.lane.b32.xlu1 %v1648_v13, %s2439_s27  ;;  %2360 = vpow2.f32 %v1538_v47  ;;  %v2038_v10 = vadd.f32 -1.0, %v2355_v12  ;;  %v2357_v19 = vpop.eup %2356 }
 0x380   : > { %v1611_v42 = vpop.permute.xlu1 %1610  ;;  %v1047_v7 = vpop.permute.xlu0 %1046  ;;  %2362 = vpow2.f32 %v1540_v44  ;;  %v1572_v22 = vsel %vm1508_vm10, %v3266_v17, %v2041_v25  ;;  %v2040_v59 = vadd.f32 -1.0, %v2357_v19 }
 0x381   : > { %v1650_v52 = vmul.f32 %v1611_v42, %v1570_v27  ;;  %v1080_v55 = vadd.f32 %v1047_v7, %v3484_v46  ;;  %v1544_v2 = vmul.f32 1.442695, %v3294_v3  ;;  %v2359_v17 = vpop.eup %2358  ;;  %v1569_v23 = vsel %vm1505_vm11, %v3264_v18, %v2038_v10 }
 0x382   : > { %v1571_v0 = vsel %vm1507_vm13, %v3272_v11, %v2040_v59  ;;  %vm1513_vm1 = vcmp.gt.f32.partialorder %v3294_v3, 0.0  ;;  %v2440_v27 = vmov 32   ;;  %v3487_v59 = vld [vmem:[#allocation8_spill] sm:$0xff] }
 0x383   : > { %v1240_v45 = vadd.f32 %v1207_v56, %v1080_v55  ;;  %1690 = vrot.lane.b32.xlu1 %v1650_v52, %s2439_s27  ;;  %2364 = vpow2.f32 %v1544_v2  ;;  %2335 = vset.pattern.permute.xlu0 %v2440_v27 }
 0x384   : > { %v1615_v51 = vpop.permute.xlu1 %1614  ;;  %v1605_v26 = vpop.permute.xlu0 %1604  ;;  %2334 = vset.pattern.permute.xlu1 %v2440_v27 }
 0x385   : > { %v1400_v6 = vadd.f32 %v1367_v61, %v1240_v45  ;;  %v1652_v49 = vmul.f32 %v1615_v51, %v1572_v22  ;;  %v1647_v50 = vmul.f32 %v1605_v26, %v1567_v1  ;;  %v2042_v61 = vadd.f32 -1.0, %v2359_v17 }
 0x387   : > { %1694 = vrot.lane.b32.xlu1 %v1652_v49, %s2439_s27  ;;  %1684 = vrot.lane.b32.xlu0 %v1647_v50, %s2439_s27  ;;  %v1496_v31 = vadd.f32 %v1480_v58, %v1400_v6  ;;  %v1573_v14 = vsel %vm1509_vm14, %v3278_v54, %v2042_v61  ;;  %v3490_v61 = vld [vmem:[#allocation11_spill] sm:$0xff] }
 0x388   : > { %v1609_v24 = vpop.permute.xlu0 %1608  ;;  %v1619_v48 = vpop.permute.xlu1 %1618 }
 0x389   : > { %v2361_v56 = vpop.eup %2360  ;;  %v1649_v53 = vmul.f32 %v1609_v24, %v1569_v23  ;;  %v1542_v36 = vmul.f32 1.442695, %v1496_v31  ;;  %vm1512_vm0 = vcmp.gt.f32.partialorder %v1496_v31, 0.0 }
 0x38a   : > { %v2043_v4 = vadd.f32 -1.0, %v2361_v56  ;;  %v2363_v34 = vpop.eup %2362 }
 0x38b   : > { %1688 = vrot.lane.b32.xlu0 %v1649_v53, %s2439_s27  ;;  %2366 = vpow2.f32 %v1542_v36  ;;  %v2044_v39 = vadd.f32 -1.0, %v2363_v34  ;;  %v3488_v36 = vld [vmem:[#allocation9_spill] sm:$0xff] }
 0x38c   : > { %v1574_v37 = vsel %vm1510_vm12, %v1494_v35, %v2043_v4  ;;  %v1613_v41 = vpop.permute.xlu0 %1612  ;;  %v1623_v54 = vpop.permute.xlu1 %1622 }
 0x38d   : > { %v1654_v18 = vmul.f32 %v1619_v48, %v1574_v37  ;;  %v1651_v30 = vmul.f32 %v1613_v41, %v1571_v0  ;;  %v2365_v33 = vpop.eup %2364  ;;  %v1575_v11 = vsel %vm1511_vm15, %v3288_v43, %v2044_v39  ;;  %v3489_v37 = vld [vmem:[#allocation10_spill] sm:$0xff] }
 0x38e   : > { %v2046_v20 = vadd.f32 -1.0, %v2365_v33  ;;  %v3492_v33 = vld [vmem:[#allocation13_spill] sm:$0xff] }
 0x38f   : > { %1698 = vrot.lane.b32.xlu1 %v1654_v18, %s2439_s27  ;;  %1692 = vrot.lane.b32.xlu0 %v1651_v30, %s2439_s27  ;;  %v3491_v30 = vld [vmem:[#allocation12_spill] sm:$0xff] }
 0x390   : > { %v1617_v21 = vpop.permute.xlu0 %1616  ;;  %v1577_v57 = vsel %vm1513_vm1, %v3294_v3, %v2046_v20  ;;  %v3493_v20 = vld [vmem:[#allocation16_spill] sm:$0xff] }
 0x391   : > { %v1653_v32 = vmul.f32 %v1617_v21, %v1573_v14 }
 0x393   : > { %1696 = vrot.lane.b32.xlu0 %v1653_v32, %s2439_s27 }
 0x394   : > { %v1621_v62 = vpop.permute.xlu0 %1620 }
 0x395   : > { %v2367_v35 = vpop.eup %2366  ;;  %v1655_v28 = vmul.f32 %v1621_v62, %v1575_v11 }
 0x396   : > { %v2045_v16 = vadd.f32 -1.0, %v2367_v35 }
 0x397   : > { %1700 = vrot.lane.b32.xlu0 %v1655_v28, %s2439_s27  ;;  %v3494_v28 = vld [vmem:[#allocation20_spill] sm:$0xff] }
 0x398   : > { %v1576_v38 = vsel %vm1512_vm0, %v1496_v31, %v2045_v16  ;;  %v1625_v29 = vpop.permute.xlu0 %1624 }
 0x399   : > { %v1656_v63 = vmul.f32 %v1623_v54, %v1576_v38  ;;  %v1657_v13 = vmul.f32 %v1625_v29, %v1577_v57  ;;  %v3495_v57 = vld [vmem:[#allocation19_spill] sm:$0xff] }
 0x39b   : > { %1702 = vrot.lane.b32.xlu1 %v1656_v63, %s2439_s27  ;;  %1704 = vrot.lane.b32.xlu0 %v1657_v13, %s2439_s27  ;;  %v3496_v63 = vld [vmem:[#allocation22_spill] sm:$0xff] }
 0x3ad   : > { %v1677_v43 = vpop.permute.xlu0 %1676 }
 0x3ae   : > { %v1726_v5 = vsel %vm1722_vm2, %v1677_v43, 0.0 }
 0x3b5   : > { %v1675_v8 = vpop.permute.xlu1 %1674 }
 0x3b6   : > { %v1723_v9 = vsel %vm1722_vm2, %v1675_v8, 0.0 }
 0x3ba   : > { %1727 = vadd.xlane.f32.xlu0 %v1726_v5  ;;  %v3497_v5 = vld [vmem:[#allocation21_spill] sm:$0xff] }
 0x3bd   : > { %v1681_v47 = vpop.permute.xlu0 %1680 }
 0x3be   : > { %v1732_v44 = vsel %vm1722_vm2, %v1681_v47, 0.0 }
 0x3bf   : > { %1724 = vadd.xlane.f32.xlu1 %v1723_v9  ;;  %v3498_v9 = vld [vmem:[#allocation14_spill] sm:$0xff] }
 0x3c3   : > { %1733 = vadd.xlane.f32.xlu1 %v1732_v44 }
 0x3c5   : > { %v1679_v3 = vpop.permute.xlu1 %1678 }
 0x3c6   : > { %v1729_v42 = vsel %vm1722_vm2, %v1679_v3, 0.0 }
 0x3c7   : > { %1730 = vadd.xlane.f32.xlu0 %v1729_v42  ;;  %v3499_v42 = vld [vmem:[#allocation23_spill] sm:$0xff] }
 0x3d1   : > { %v1683_v7 = vpop.permute.xlu1 %1682 }
 0x3d2   : > { %v1735_v25 = vsel %vm1722_vm2, %v1683_v7, 0.0  ;;  %v3500_v7 = vld [vmem:[#allocation17_spill] sm:$0xff] }
 0x3d3   : > { %1736 = vadd.xlane.f32.xlu0 %v1735_v25 }
 0x3f1   : > { %v1687_v15 = vpop.permute.xlu1 %1686 }
 0x3f2   : > { %v1741_v12 = vsel %vm1722_vm2, %v1687_v15, 0.0 }
 0x3f3   : > { %1742 = vadd.xlane.f32.xlu0 %v1741_v12  ;;  %v3501_v12 = vld [vmem:[#allocation15_spill] sm:$0xff] }
 0x3f5   : > { %v1691_v52 = vpop.permute.xlu1 %1690 }
 0x3f6   : > { %v1747_v46 = vsel %vm1722_vm2, %v1691_v52, 0.0 }
 0x3f7   : > { %1748 = vadd.xlane.f32.xlu0 %v1747_v46 }
 0x3f9   : > { %v1695_v55 = vpop.permute.xlu1 %1694  ;;  %v1685_v2 = vpop.permute.xlu0 %1684 }
 0x3fa   : > { %v1753_v45 = vsel %vm1722_vm2, %v1695_v55, 0.0  ;;  %v1738_v51 = vsel %vm1722_vm2, %v1685_v2, 0.0  ;;  %v3502_v55 = vld [vmem:[#allocation18_spill] sm:$0xff] }
 0x3fb   : > { %1754 = vadd.xlane.f32.xlu0 %v1753_v45  ;;  %1739 = vadd.xlane.f32.xlu1 %v1738_v51 }
 0x3fd   : > { %v1689_v22 = vpop.permute.xlu0 %1688 }
 0x3fe   : > { %v1744_v1 = vsel %vm1722_vm2, %v1689_v22, 0.0 }
 0x3ff   : > { %1745 = vadd.xlane.f32.xlu1 %v1744_v1 }
 0x401   : > { %v1699_v26 = vpop.permute.xlu1 %1698  ;;  %v1693_v10 = vpop.permute.xlu0 %1692 }
 0x402   : > { %v1759_v19 = vsel %vm1722_vm2, %v1699_v26, 0.0  ;;  %v1750_v6 = vsel %vm1722_vm2, %v1693_v10, 0.0 }
 0x403   : > { %1760 = vadd.xlane.f32.xlu0 %v1759_v19  ;;  %1751 = vadd.xlane.f32.xlu1 %v1750_v6 }
 0x405   : > { %v1697_v49 = vpop.permute.xlu0 %1696 }
 0x406   : > { %v1756_v50 = vsel %vm1722_vm2, %v1697_v49, 0.0 }
 0x407   : > { %1757 = vadd.xlane.f32.xlu1 %v1756_v50 }
 0x409   : > { %v1701_v40 = vpop.permute.xlu0 %1700 }
 0x40a   : > { %v1762_v60 = vsel %vm1722_vm2, %v1701_v40, 0.0 }
 0x40b   : > { %1763 = vadd.xlane.f32.xlu1 %v1762_v60 }
 0x40d   : > { %v1703_v58 = vpop.permute.xlu1 %1702  ;;  %v1705_v31 = vpop.permute.xlu0 %1704 }
 0x40e   : > { %v1765_v17 = vsel %vm1722_vm2, %v1703_v58, 0.0  ;;  %v1768_v23 = vsel %vm1722_vm2, %v1705_v31, 0.0 }
 0x40f   : > { %1766 = vadd.xlane.f32.xlu0 %v1765_v17  ;;  %1769 = vadd.xlane.f32.xlu1 %v1768_v23 }
 0x447   : > { %v1728_v24 = vpop.xlane.xlu0 %1727 }
 0x448   : > { %v1772_v56 = vadd.f32 %v1728_v24, %v3487_v59 }
 0x44a   : > { %1794 = vperm.xlu1 %2334, %v1772_v56  }
 0x44c   : > { %v1725_v53 = vpop.xlane.xlu1 %1724 }
 0x44d   : > { %v1771_v4 = vadd.f32 %v1725_v53, %v3488_v36 }
 0x44f   : > { %1789 = vperm.xlu0 %2335, %v1771_v4  }
 0x450   : > { %v1734_v48 = vpop.xlane.xlu1 %1733 }
 0x451   : > { %v1774_v0 = vadd.f32 %v1734_v48, %v3489_v37 }
 0x453   : > { %1804 = vperm.xlu1 %2334, %v1774_v0  }
 0x454   : > { %v1731_v41 = vpop.xlane.xlu0 %1730 }
 0x455   : > { %v1773_v34 = vadd.f32 %v1731_v41, %v3490_v61 }
 0x457   : > { %1799 = vperm.xlu1 %2334, %v1773_v34  }
 0x460   : > { %v1737_v21 = vpop.xlane.xlu0 %1736 }
 0x461   : > { %v1775_v32 = vadd.f32 %v1737_v21, %v3492_v33 }
 0x480   : > { %v1743_v11 = vpop.xlane.xlu0 %1742 }
 0x481   : > { %v1777_v29 = vadd.f32 %v1743_v11, %v3495_v57 }
 0x484   : > { %v1749_v54 = vpop.xlane.xlu0 %1748 }
 0x485   : > { %v1779_v8 = vadd.f32 %v1749_v54, %v3497_v5 }
 0x488   : > { %v1740_v18 = vpop.xlane.xlu1 %1739  ;;  %v1755_v44 = vpop.xlane.xlu0 %1754 }
 0x489   : > { %v1776_v14 = vadd.f32 %v1740_v18, %v3491_v30  ;;  %v1781_v27 = vadd.f32 %v1755_v44, %v3499_v42 }
 0x48b   : > { %1814 = vperm.xlu1 %2334, %v1776_v14  }
 0x48c   : > { %v1746_v39 = vpop.xlane.xlu1 %1745 }
 0x48d   : > { %v1778_v35 = vadd.f32 %v1746_v39, %v3493_v20 }
 0x48f   : > { %1809 = vperm.xlu1 %2334, %v1775_v32  }
 0x490   : > { %v1752_v62 = vpop.xlane.xlu1 %1751  ;;  %v1761_v15 = vpop.xlane.xlu0 %1760 }
 0x491   : > { %v1780_v16 = vadd.f32 %v1752_v62, %v3494_v28  ;;  %v1783_v52 = vadd.f32 %v1761_v15, %v3501_v12 }
 0x493   : > { %1834 = vperm.xlu0 %2335, %v1780_v16   ;;  %1824 = vperm.xlu1 %2334, %v1778_v35  }
 0x494   : > { %v1758_v38 = vpop.xlane.xlu1 %1757 }
 0x495   : > { %v1782_v13 = vadd.f32 %v1758_v38, %v3496_v63 }
 0x497   : > { %1844 = vperm.xlu0 %2335, %v1782_v13   ;;  %1819 = vperm.xlu1 %2334, %v1777_v29  }
 0x498   : > { %v1764_v43 = vpop.xlane.xlu1 %1763 }
 0x499   : > { %v1784_v47 = vadd.f32 %v1764_v43, %v3498_v9 }
 0x49b   : > { %1854 = vperm.xlu0 %2335, %v1784_v47   ;;  %1829 = vperm.xlu1 %2334, %v1779_v8  }
 0x49c   : > { %v1770_v3 = vpop.xlane.xlu1 %1769  ;;  %v1767_v46 = vpop.xlane.xlu0 %1766 }
 0x49d   : > { %v1786_v25 = vadd.f32 %v1770_v3, %v3500_v7  ;;  %v1785_v2 = vadd.f32 %v1767_v46, %v3502_v55 }
 0x49f   : > { %1864 = vperm.xlu0 %2335, %v1786_v25   ;;  %1839 = vperm.xlu1 %2334, %v1781_v27  }
 0x4a3   : > { %1849 = vperm.xlu1 %2334, %v1783_v52  }
 0x4a7   : > { %1859 = vperm.xlu1 %2334, %v1785_v2  }
 0x4c9   : > { %v1795_v45 = vpop.permute.xlu1 %1794 }
 0x4ca   : > { %1868 = vst [vmem:[%s3362_s4 + $0x8] sm:$0xff] %v1795_v45 }
 0x4ce   : > { %v1790_v51 = vpop.permute.xlu0 %1789 }
 0x4cf   : > { %1867 = vst [vmem:[%s3362_s4] sm:$0xff] %v1790_v51 }
 0x4d2   : > { %v1805_v22 = vpop.permute.xlu1 %1804 }
 0x4d3   : > { %1870 = vst [vmem:[%s3362_s4 + $0x18] sm:$0xff] %v1805_v22 }
 0x4d6   : > { %v1800_v1 = vpop.permute.xlu1 %1799 }
 0x4d7   : > { %1869 = vst [vmem:[%s3362_s4 + $0x10] sm:$0xff] %v1800_v1 }
 0x50a   : > { %v1815_v26 = vpop.permute.xlu1 %1814 }
 0x50b   : > { %1872 = vst [vmem:[%s3362_s4 + $0x28] sm:$0xff] %v1815_v26 }
 0x50e   : > { %v1810_v10 = vpop.permute.xlu1 %1809 }
 0x50f   : > { %1871 = vst [vmem:[%s3362_s4 + $0x20] sm:$0xff] %v1810_v10 }
 0x512   : > { %v1825_v19 = vpop.permute.xlu1 %1824  ;;  %v1835_v6 = vpop.permute.xlu0 %1834 }
 0x513   : > { %1874 = vst [vmem:[%s3362_s4 + $0x38] sm:$0xff] %v1825_v19  ;;  %1876 = vst [vmem:[%s3362_s4 + $0x48] sm:$0xff] %v1835_v6 }
 0x516   : > { %v1820_v49 = vpop.permute.xlu1 %1819  ;;  %v1845_v50 = vpop.permute.xlu0 %1844 }
 0x517   : > { %1873 = vst [vmem:[%s3362_s4 + $0x30] sm:$0xff] %v1820_v49  ;;  %1878 = vst [vmem:[%s3362_s4 + $0x58] sm:$0xff] %v1845_v50 }
 0x51a   : > { %v1830_v40 = vpop.permute.xlu1 %1829  ;;  %v1855_v60 = vpop.permute.xlu0 %1854 }
 0x51b   : > { %1875 = vst [vmem:[%s3362_s4 + $0x40] sm:$0xff] %v1830_v40  ;;  %1880 = vst [vmem:[%s3362_s4 + $0x68] sm:$0xff] %v1855_v60 }
 0x51e   : > { %v1840_v58 = vpop.permute.xlu1 %1839  ;;  %v1865_v31 = vpop.permute.xlu0 %1864 }
 0x51f   : > { %1877 = vst [vmem:[%s3362_s4 + $0x50] sm:$0xff] %v1840_v58  ;;  %1882 = vst [vmem:[%s3362_s4 + $0x78] sm:$0xff] %v1865_v31 }
 0x522   : > { %v1850_v17 = vpop.permute.xlu1 %1849 }
 0x523   : > { %1879 = vst [vmem:[%s3362_s4 + $0x60] sm:$0xff] %v1850_v17 }
 0x526   : > { %v1860_v23 = vpop.permute.xlu1 %1859 }
 0x527   : > { %1881 = vst [vmem:[%s3362_s4 + $0x70] sm:$0xff] %v1860_v23 }
 0x528   : > { %2381 = shalt.err (!%p2378_p3)
}
 0x529   : > { %s2382_s20 = scalar_lea.hbm %s3384_s9, 2048  ;;  %s2386_s26 = scalar_lea.hbm %s3436_s3, 8192 }
 0x52a   : > { %p2383_p4 = scmp.ne.s32.totalorder %s3384_s9, %s2382_s20  ;;  %p2387_p9 = scmp.lt.u32.totalorder %s3384_s9, %s3436_s3 }
 0x52b   : > { %p2388_p10 = scmp.lt.u32.totalorder %s2386_s26, %s2382_s20  ;;  %p2390_p12 = scmp.lt.u32.totalorder %s2382_s20, %s3384_s9 }
 0x52c   : > { %p2384_p7 = pnand %p2383_p4, %p2501_p5 }
 0x52d   : > { %p2389_p11 = por %p2388_p10, %p2387_p9 }
 0x52e   : > { %p2385_p8 = pneg %p2384_p7 }
 0x52f   : > { %p2391_p13 = por %p2390_p12, %p2389_p11 }
 0x531   : > { %p2392_p0 = pnand %p2391_p13, %p2385_p8 }
 0x533   : > { %2395 = shalt.err (!%p2392_p0)
}
 0x534   : > { %s2442_s29 = smov 128  }
 0x535   : > { %2277 = dma.vmem_to_hbm [thread:$0]  (%p2501_p5), %s3386_s6, 2048, %s3384_s9, %s3391_s11, %s2442_s29, %s2442_s29, %s2436_s19  }
 0x536 PF: > { %p2283_p1 = scmp.ge.s32.totalorder %s2430_s15, 2  ;;  %s1912_s4 = sand.u32 1, %s2418_s12  }
 0x537   : > { %s1913_s5 = scalar_lea.sflag [#allocation3], %s1912_s4 }
 0x538   : > { %p2280_p2 = pnand %p2283_p1, %p2505_p6 }
 0x53a   : > { %2413 = dma.done.wait (!%p2280_p2), %s1913_s5, 2048  }
 0x53b   : > { %2415 = vsyncadd (!%p2280_p2), %s1913_s5, 4294965248  ;;  %p13_p3 = scmp.ge.s32.totalorder %s2488_s18, 6   ;;  %s3503_s12 = smov %s2422_s13 }
 0x53c   : > { %s3504_s13 = smov %s2426_s14  ;;  %s3505_s14 = smov %s2499_s21 }
 0x53d   : > { %s3506_s15 = smov %s2488_s18  ;;  %15 = sbr.rel (!%p13_p3) target bundleno = 3 (0x3), region = 70 }
 0x544   :  { %1918 = vsyncpa [#allocation3], 1 }
 0x545   :  { %1920 = vsyncpa [#allocation3 + $0x1], 1 }

</bundles_post_ra>
